<compile_context>
chip_gen: v7x
topology: tpu7x:2x2x1
jax: 0.10.0
libtpu: 0.0.40
codegen_flags: <defaults>
</compile_context>

<pallas_src>
import math
import functools

import jax
import jax.numpy as jnp
from jax.experimental import pallas as pl
from jax.experimental.pallas import tpu as pltpu

NEG_INF = -1.0e6  # matches d2l masked_softmax fill value (-1000000.0)


def _layernorm(z, gamma, beta, eps=1e-5):
    """LayerNorm over the last axis (single-pass variance)."""
    mu = jnp.mean(z, axis=-1, keepdims=True)
    var = jnp.mean(z * z, axis=-1, keepdims=True) - mu * mu
    return (z - mu) * jax.lax.rsqrt(var + eps) * gamma + beta


def encoder_stack_kernel(num_heads, num_layers, seq_len,
                         vl_ref, x_ref,
                         wqkv_ref, wo_ref,
                         g1_ref, be1_ref,
                         w1_ref, b1_ref, w2_ref, b2_ref,
                         g2_ref, be2_ref,
                         o_ref, attn_sc):
    BT, H = x_ref.shape
    T = seq_len
    B = BT // T
    nh = num_heads
    dh = H // nh
    scale = 1.0 / math.sqrt(dh)

    # Key-position mask per batch row, hoisted out of every loop.
    col = jax.lax.broadcasted_iota(jnp.int32, (T, T), 1)
    masks = [col < vl_ref[b] for b in range(B)]

    x2 = x_ref[...]                                           # (B*T, H)
    for l in range(num_layers):                               # layers fused in-kernel
        # Fused QKV projection: one lane-dense (B*T, 3H) matmul (use_bias=False).
        qkv = jnp.dot(x2, wqkv_ref[l], preferred_element_type=jnp.float32)
        q = qkv[:, 0:H] * scale          # pre-scale q instead of the (T,T) scores
        k = qkv[:, H:2 * H]
        v = qkv[:, 2 * H:3 * H]

        # Multi-head masked attention; (batch, head) statically unrolled,
        # head outputs stored into a VMEM scratch slab (no concatenate).
        for b in range(B):
            rs = slice(b * T, (b + 1) * T)
            for h in range(nh):
                cs = slice(h * dh, (h + 1) * dh)
                qh, kh, vh = q[rs, cs], k[rs, cs], v[rs, cs]
                # QK^T via dot_general contracting last dims (no transpose).
                s = jax.lax.dot_general(qh, kh, (((1,), (1,)), ((), ())),
                                        preferred_element_type=jnp.float32)
                s = jnp.where(masks[b], s, NEG_INF)
                s = s - jnp.max(s, axis=-1, keepdims=True)
                p = jnp.exp(s)
                # Exact normalization: the approximate EUP reciprocal pushed the
                # end-to-end error past tolerance; exact divide is free at (8,8).
                p = p / jnp.sum(p, axis=-1, keepdims=True)
                attn_sc[rs, cs] = jnp.dot(p, vh,
                                          preferred_element_type=jnp.float32)

        attn = jnp.dot(attn_sc[...], wo_ref[l],
                       preferred_element_type=jnp.float32)
        y = _layernorm(x2 + attn, g1_ref[l], be1_ref[l])       # AddNorm 1

        # Position-wise FFN
        h1 = jnp.maximum(
            jnp.dot(y, w1_ref[l], preferred_element_type=jnp.float32)
            + b1_ref[l], 0.0)
        ffn = jnp.dot(h1, w2_ref[l], preferred_element_type=jnp.float32) + b2_ref[l]
        x2 = _layernorm(y + ffn, g2_ref[l], be2_ref[l])        # AddNorm 2

    o_ref[...] = x2


def _stack_layer_params(layers):
    """Stack per-layer weights on a leading layer axis; fuse Wq|Wk|Wv -> (H,3H)."""
    wqkv = jnp.stack([jnp.concatenate([p["wq"], p["wk"], p["wv"]], axis=1)
                      for p in layers])                        # (L, H, 3H)

    def stk(name):
        return jnp.stack([p[name] for p in layers])

    return (wqkv, stk("wo"), stk("g1"), stk("be1"),
            stk("w1"), stk("b1"), stk("w2"), stk("b2"),
            stk("g2"), stk("be2"))


def encoder_stack(x2, valid_lens, stacked_params, num_heads, seq_len):
    BT, H = x2.shape
    num_layers = stacked_params[0].shape[0]
    in_specs = [pl.BlockSpec(memory_space=pltpu.MemorySpace.SMEM)]      # valid_lens
    in_specs += [pl.BlockSpec(memory_space=pltpu.MemorySpace.VMEM)
                 for _ in range(1 + len(stacked_params))]               # x + weights
    return pl.pallas_call(
        functools.partial(encoder_stack_kernel, num_heads, num_layers, seq_len),
        out_shape=jax.ShapeDtypeStruct((BT, H), jnp.float32),
        in_specs=in_specs,
        out_specs=pl.BlockSpec(memory_space=pltpu.MemorySpace.VMEM),
        scratch_shapes=[pltpu.VMEM((BT, H), jnp.float32)],   # per-head attention slab
    )(valid_lens.astype(jnp.int32), x2, *stacked_params)


def positional_encoding(T, H):
    pos = jnp.arange(T, dtype=jnp.float32)[:, None]
    div = jnp.power(10000.0, jnp.arange(0, H, 2, dtype=jnp.float32) / H)
    ang = pos / div                                  # (T, H//2)
    pe = jnp.zeros((T, H), jnp.float32)
    pe = pe.at[:, 0::2].set(jnp.sin(ang))
    pe = pe.at[:, 1::2].set(jnp.cos(ang))
    return pe


@functools.partial(jax.jit, static_argnames=("num_heads",))
def transformer_encoder(tokens, valid_lens, params, pe, *, num_heads):
    # TODO(synk): embedding gather stays host-side JAX glue (no clean blocked Pallas
    # equivalent at this vocab/size); positional encoding table is precomputed.
    emb = params["embedding"][tokens]                # (B, T, H)
    B, T, H = emb.shape
    x = (emb * math.sqrt(H) + pe[None]).reshape(B * T, H)
    stacked = _stack_layer_params(params["layers"])
    out = encoder_stack(x, valid_lens, stacked, num_heads, T)
    return out.reshape(B, T, H)


# ---------------- pure-JAX reference (same math, no Pallas) ----------------
def ref_forward(tokens, valid_lens, params, pe, num_heads):
    # HIGHEST precision so XLA's default bf16-pass f32 matmuls on TPU don't
    # contaminate the comparison against the kernel's f32 MXU matmuls.
    with jax.default_matmul_precision("highest"):
        emb = params["embedding"][tokens]
        B, T, H = emb.shape
        x = emb * math.sqrt(H) + pe[None]
        for p in params["layers"]:
            dh = H // num_heads
            q = x @ p["wq"]
            k = x @ p["wk"]
            v = x @ p["wv"]
            qh = q.reshape(B, T, num_heads, dh).transpose(0, 2, 1, 3)
            kh = k.reshape(B, T, num_heads, dh).transpose(0, 2, 1, 3)
            vh = v.reshape(B, T, num_heads, dh).transpose(0, 2, 1, 3)
            s = jnp.einsum("bhqd,bhkd->bhqk", qh, kh) / math.sqrt(dh)
            mask = (jnp.arange(T)[None, None, None, :]
                    < valid_lens[:, None, None, None])
            s = jnp.where(mask, s, NEG_INF)
            w = jax.nn.softmax(s, axis=-1)
            o = (jnp.einsum("bhqk,bhkd->bhqd", w, vh)
                 .transpose(0, 2, 1, 3).reshape(B, T, H))
            attn = o @ p["wo"]
            y = _layernorm(x + attn, p["g1"], p["be1"])
            ffn = jnp.maximum(y @ p["w1"] + p["b1"], 0.0) @ p["w2"] + p["b2"]
            x = _layernorm(y + ffn, p["g2"], p["be2"])
        return x


def init_params(key, vocab, H, F, num_layers):
    keys = jax.random.split(key, 1 + num_layers)
    params = {
        "embedding": jax.random.normal(keys[0], (vocab, H), jnp.float32) * 0.1,
        "layers": [],
    }
    for i in range(num_layers):
        ks = jax.random.split(keys[1 + i], 10)
        sc = 1.0 / math.sqrt(H)
        layer = {
            "wq": jax.random.uniform(ks[0], (H, H), jnp.float32, -sc, sc),
            "wk": jax.random.uniform(ks[1], (H, H), jnp.float32, -sc, sc),
            "wv": jax.random.uniform(ks[2], (H, H), jnp.float32, -sc, sc),
            "wo": jax.random.uniform(ks[3], (H, H), jnp.float32, -sc, sc),
            "g1": jnp.ones((1, H), jnp.float32),
            "be1": jnp.zeros((1, H), jnp.float32),
            "w1": jax.random.uniform(ks[4], (H, F), jnp.float32, -sc, sc),
            "b1": jax.random.uniform(ks[5], (1, F), jnp.float32, -sc, sc),
            "w2": jax.random.uniform(ks[6], (F, H), jnp.float32,
                                     -1.0 / math.sqrt(F), 1.0 / math.sqrt(F)),
            "b2": jax.random.uniform(ks[7], (1, H), jnp.float32,
                                     -1.0 / math.sqrt(F), 1.0 / math.sqrt(F)),
            "g2": jnp.ones((1, H), jnp.float32),
            "be2": jnp.zeros((1, H), jnp.float32),
        }
        params["layers"].append(layer)
    return params


if __name__ == "__main__":
    # Small config: vocab=50, num_hiddens=32, ffn_hiddens=64, heads=4, layers=2
    VOCAB, H, F, HEADS, LAYERS = 50, 32, 64, 4, 2
    B, T = 2, 8

    key = jax.random.PRNGKey(0)
    k_par, k_tok = jax.random.split(key)
    params = init_params(k_par, VOCAB, H, F, LAYERS)

    tokens = jax.random.randint(k_tok, (B, T), 0, VOCAB, dtype=jnp.int32)
    valid_lens = jnp.array([8, 5], dtype=jnp.int32)
    pe = positional_encoding(T, H)   # precomputed once (eval-mode dropout is identity)

    out = transformer_encoder(tokens, valid_lens, params, pe, num_heads=HEADS)
    out = jax.block_until_ready(out)

    ref = jax.block_until_ready(ref_forward(tokens, valid_lens, params, pe, HEADS))
    assert out.shape == (B, T, H)
    err = float(jnp.max(jnp.abs(out - ref)))
    assert jnp.allclose(out, ref, rtol=2e-3, atol=2e-3), f"mismatch vs reference: {err}"

    print("KERNEL_OK")
</pallas_src>

<mosaic_0001>
module attributes {stable_mosaic.version = 11 : i64} {
  func.func @encoder_stack_kernel(%arg0: memref<2xi32, #tpu.memory_space<smem>>, %arg1: memref<16x32xf32, #tpu.memory_space<vmem>>, %arg2: memref<2x32x96xf32, #tpu.memory_space<vmem>>, %arg3: memref<2x32x32xf32, #tpu.memory_space<vmem>>, %arg4: memref<2x1x32xf32, #tpu.memory_space<vmem>>, %arg5: memref<2x1x32xf32, #tpu.memory_space<vmem>>, %arg6: memref<2x32x64xf32, #tpu.memory_space<vmem>>, %arg7: memref<2x1x64xf32, #tpu.memory_space<vmem>>, %arg8: memref<2x64x32xf32, #tpu.memory_space<vmem>>, %arg9: memref<2x1x32xf32, #tpu.memory_space<vmem>>, %arg10: memref<2x1x32xf32, #tpu.memory_space<vmem>>, %arg11: memref<2x1x32xf32, #tpu.memory_space<vmem>>, %arg12: memref<16x32xf32, #tpu.memory_space<vmem>>, %arg13: memref<16x32xf32, #tpu.memory_space<vmem>>) attributes {dimension_semantics = [], scalar_prefetch = 0 : i64, scratch_operands = 1 : i64, tpu.core_type = #tpu.core_type<tc>} {
    %0 = tpu.iota {dimensions = array<i32: 1>} : vector<8x8xi32>
    %c0 = arith.constant 0 : index
    %1 = memref.load %arg0[%c0] : memref<2xi32, #tpu.memory_space<smem>>
    %2 = vector.broadcast %1 : i32 to vector<8x8xi32>
    %3 = arith.cmpi slt, %0, %2 : vector<8x8xi32>
    %c1 = arith.constant 1 : index
    %4 = memref.load %arg0[%c1] : memref<2xi32, #tpu.memory_space<smem>>
    %5 = vector.broadcast %4 : i32 to vector<8x8xi32>
    %6 = arith.cmpi slt, %0, %5 : vector<8x8xi32>
    %c0_0 = arith.constant 0 : index
    %c0_1 = arith.constant 0 : index
    %7 = vector.load %arg1[%c0_0, %c0_1] : memref<16x32xf32, #tpu.memory_space<vmem>>, vector<16x32xf32>
    %c0_2 = arith.constant 0 : index
    %c0_3 = arith.constant 0 : index
    %c0_4 = arith.constant 0 : index
    %8 = vector.load %arg2[%c0_2, %c0_3, %c0_4] : memref<2x32x96xf32, #tpu.memory_space<vmem>>, vector<1x32x96xf32>
    %9 = vector.shape_cast %8 : vector<1x32x96xf32> to vector<32x96xf32>
    %cst = arith.constant dense<0.000000e+00> : vector<16x96xf32>
    %10 = tpu.matmul %7, %9, %cst {dimension_numbers = #tpu.dot_dimension_numbers<[1], [0], [0], [1], [0, 0, 1, 1], [], []>} : vector<16x32xf32>, vector<32x96xf32>, vector<16x96xf32> -> vector<16x96xf32>
    %11 = vector.extract_strided_slice %10 {offsets = [0, 0], sizes = [16, 32], strides = [1, 1]} : vector<16x96xf32> to vector<16x32xf32>
    %cst_5 = arith.constant 0.353553385 : f32
    %12 = vector.broadcast %cst_5 : f32 to vector<16x32xf32>
    %13 = arith.mulf %11, %12 : vector<16x32xf32>
    %14 = vector.extract_strided_slice %10 {offsets = [0, 32], sizes = [16, 32], strides = [1, 1]} : vector<16x96xf32> to vector<16x32xf32>
    %15 = vector.extract_strided_slice %10 {offsets = [0, 64], sizes = [16, 32], strides = [1, 1]} : vector<16x96xf32> to vector<16x32xf32>
    %16 = vector.extract_strided_slice %13 {offsets = [0, 0], sizes = [8, 8], strides = [1, 1]} : vector<16x32xf32> to vector<8x8xf32>
    %17 = vector.extract_strided_slice %14 {offsets = [0, 0], sizes = [8, 8], strides = [1, 1]} : vector<16x32xf32> to vector<8x8xf32>
    %18 = vector.extract_strided_slice %15 {offsets = [0, 0], sizes = [8, 8], strides = [1, 1]} : vector<16x32xf32> to vector<8x8xf32>
    %cst_6 = arith.constant dense<0.000000e+00> : vector<8x8xf32>
    %19 = tpu.matmul %16, %17, %cst_6 {dimension_numbers = #tpu.dot_dimension_numbers<[1], [1], [0], [0], [0, 0, 1, 0], [], []>} : vector<8x8xf32>, vector<8x8xf32>, vector<8x8xf32> -> vector<8x8xf32>
    %cst_7 = arith.constant -1.000000e+06 : f32
    %20 = vector.broadcast %cst_7 : f32 to vector<8x8xf32>
    %21 = arith.select %3, %19, %20 : vector<8x8xi1>, vector<8x8xf32>
    %cst_8 = arith.constant dense<0xFF800000> : vector<8xf32>
    %22 = vector.multi_reduction <maximumf>, %21, %cst_8 [1] : vector<8x8xf32> to vector<8xf32>
    %23 = vector.shape_cast %22 : vector<8xf32> to vector<8x1xf32>
    %24 = vector.broadcast %23 : vector<8x1xf32> to vector<8x8xf32>
    %25 = arith.subf %21, %24 : vector<8x8xf32>
    %26 = math.exp %25 : vector<8x8xf32>
    %cst_9 = arith.constant dense<0.000000e+00> : vector<8xf32>
    %27 = vector.multi_reduction <add>, %26, %cst_9 [1] : vector<8x8xf32> to vector<8xf32>
    %28 = vector.shape_cast %27 : vector<8xf32> to vector<8x1xf32>
    %29 = vector.broadcast %28 : vector<8x1xf32> to vector<8x8xf32>
    %30 = arith.divf %26, %29 : vector<8x8xf32>
    %cst_10 = arith.constant dense<0.000000e+00> : vector<8x8xf32>
    %31 = tpu.matmul %30, %18, %cst_10 {dimension_numbers = #tpu.dot_dimension_numbers<[1], [0], [0], [1], [0, 0, 1, 1], [], []>} : vector<8x8xf32>, vector<8x8xf32>, vector<8x8xf32> -> vector<8x8xf32>
    %c0_11 = arith.constant 0 : index
    %c0_12 = arith.constant 0 : index
    %32 = vector.load %arg13[%c0_11, %c0_12] : memref<16x32xf32, #tpu.memory_space<vmem>>, vector<8x8xf32>
    tpu.vector_store %arg13[%c0_11, %c0_12], %31 {strides = array<i32>} : memref<16x32xf32, #tpu.memory_space<vmem>>, vector<8x8xf32>,
    %33 = vector.extract_strided_slice %13 {offsets = [0, 8], sizes = [8, 8], strides = [1, 1]} : vector<16x32xf32> to vector<8x8xf32>
    %34 = vector.extract_strided_slice %14 {offsets = [0, 8], sizes = [8, 8], strides = [1, 1]} : vector<16x32xf32> to vector<8x8xf32>
    %35 = vector.extract_strided_slice %15 {offsets = [0, 8], sizes = [8, 8], strides = [1, 1]} : vector<16x32xf32> to vector<8x8xf32>
    %cst_13 = arith.constant dense<0.000000e+00> : vector<8x8xf32>
    %36 = tpu.matmul %33, %34, %cst_13 {dimension_numbers = #tpu.dot_dimension_numbers<[1], [1], [0], [0], [0, 0, 1, 0], [], []>} : vector<8x8xf32>, vector<8x8xf32>, vector<8x8xf32> -> vector<8x8xf32>
    %cst_14 = arith.constant -1.000000e+06 : f32
    %37 = vector.broadcast %cst_14 : f32 to vector<8x8xf32>
    %38 = arith.select %3, %36, %37 : vector<8x8xi1>, vector<8x8xf32>
    %cst_15 = arith.constant dense<0xFF800000> : vector<8xf32>
    %39 = vector.multi_reduction <maximumf>, %38, %cst_15 [1] : vector<8x8xf32> to vector<8xf32>
    %40 = vector.shape_cast %39 : vector<8xf32> to vector<8x1xf32>
    %41 = vector.broadcast %40 : vector<8x1xf32> to vector<8x8xf32>
    %42 = arith.subf %38, %41 : vector<8x8xf32>
    %43 = math.exp %42 : vector<8x8xf32>
    %cst_16 = arith.constant dense<0.000000e+00> : vector<8xf32>
    %44 = vector.multi_reduction <add>, %43, %cst_16 [1] : vector<8x8xf32> to vector<8xf32>
    %45 = vector.shape_cast %44 : vector<8xf32> to vector<8x1xf32>
    %46 = vector.broadcast %45 : vector<8x1xf32> to vector<8x8xf32>
    %47 = arith.divf %43, %46 : vector<8x8xf32>
    %cst_17 = arith.constant dense<0.000000e+00> : vector<8x8xf32>
    %48 = tpu.matmul %47, %35, %cst_17 {dimension_numbers = #tpu.dot_dimension_numbers<[1], [0], [0], [1], [0, 0, 1, 1], [], []>} : vector<8x8xf32>, vector<8x8xf32>, vector<8x8xf32> -> vector<8x8xf32>
    %c0_18 = arith.constant 0 : index
    %c8 = arith.constant 8 : index
    %49 = vector.load %arg13[%c0_18, %c8] : memref<16x32xf32, #tpu.memory_space<vmem>>, vector<8x8xf32>
    tpu.vector_store %arg13[%c0_18, %c8], %48 {strides = array<i32>} : memref<16x32xf32, #tpu.memory_space<vmem>>, vector<8x8xf32>,
    %50 = vector.extract_strided_slice %13 {offsets = [0, 16], sizes = [8, 8], strides = [1, 1]} : vector<16x32xf32> to vector<8x8xf32>
    %51 = vector.extract_strided_slice %14 {offsets = [0, 16], sizes = [8, 8], strides = [1, 1]} : vector<16x32xf32> to vector<8x8xf32>
    %52 = vector.extract_strided_slice %15 {offsets = [0, 16], sizes = [8, 8], strides = [1, 1]} : vector<16x32xf32> to vector<8x8xf32>
    %cst_19 = arith.constant dense<0.000000e+00> : vector<8x8xf32>
    %53 = tpu.matmul %50, %51, %cst_19 {dimension_numbers = #tpu.dot_dimension_numbers<[1], [1], [0], [0], [0, 0, 1, 0], [], []>} : vector<8x8xf32>, vector<8x8xf32>, vector<8x8xf32> -> vector<8x8xf32>
    %cst_20 = arith.constant -1.000000e+06 : f32
    %54 = vector.broadcast %cst_20 : f32 to vector<8x8xf32>
    %55 = arith.select %3, %53, %54 : vector<8x8xi1>, vector<8x8xf32>
    %cst_21 = arith.constant dense<0xFF800000> : vector<8xf32>
    %56 = vector.multi_reduction <maximumf>, %55, %cst_21 [1] : vector<8x8xf32> to vector<8xf32>
    %57 = vector.shape_cast %56 : vector<8xf32> to vector<8x1xf32>
    %58 = vector.broadcast %57 : vector<8x1xf32> to vector<8x8xf32>
    %59 = arith.subf %55, %58 : vector<8x8xf32>
    %60 = math.exp %59 : vector<8x8xf32>
    %cst_22 = arith.constant dense<0.000000e+00> : vector<8xf32>
    %61 = vector.multi_reduction <add>, %60, %cst_22 [1] : vector<8x8xf32> to vector<8xf32>
    %62 = vector.shape_cast %61 : vector<8xf32> to vector<8x1xf32>
    %63 = vector.broadcast %62 : vector<8x1xf32> to vector<8x8xf32>
    %64 = arith.divf %60, %63 : vector<8x8xf32>
    %cst_23 = arith.constant dense<0.000000e+00> : vector<8x8xf32>
    %65 = tpu.matmul %64, %52, %cst_23 {dimension_numbers = #tpu.dot_dimension_numbers<[1], [0], [0], [1], [0, 0, 1, 1], [], []>} : vector<8x8xf32>, vector<8x8xf32>, vector<8x8xf32> -> vector<8x8xf32>
    %c0_24 = arith.constant 0 : index
    %c16 = arith.constant 16 : index
    %66 = vector.load %arg13[%c0_24, %c16] : memref<16x32xf32, #tpu.memory_space<vmem>>, vector<8x8xf32>
    tpu.vector_store %arg13[%c0_24, %c16], %65 {strides = array<i32>} : memref<16x32xf32, #tpu.memory_space<vmem>>, vector<8x8xf32>,
    %67 = vector.extract_strided_slice %13 {offsets = [0, 24], sizes = [8, 8], strides = [1, 1]} : vector<16x32xf32> to vector<8x8xf32>
    %68 = vector.extract_strided_slice %14 {offsets = [0, 24], sizes = [8, 8], strides = [1, 1]} : vector<16x32xf32> to vector<8x8xf32>
    %69 = vector.extract_strided_slice %15 {offsets = [0, 24], sizes = [8, 8], strides = [1, 1]} : vector<16x32xf32> to vector<8x8xf32>
    %cst_25 = arith.constant dense<0.000000e+00> : vector<8x8xf32>
    %70 = tpu.matmul %67, %68, %cst_25 {dimension_numbers = #tpu.dot_dimension_numbers<[1], [1], [0], [0], [0, 0, 1, 0], [], []>} : vector<8x8xf32>, vector<8x8xf32>, vector<8x8xf32> -> vector<8x8xf32>
    %cst_26 = arith.constant -1.000000e+06 : f32
    %71 = vector.broadcast %cst_26 : f32 to vector<8x8xf32>
    %72 = arith.select %3, %70, %71 : vector<8x8xi1>, vector<8x8xf32>
    %cst_27 = arith.constant dense<0xFF800000> : vector<8xf32>
    %73 = vector.multi_reduction <maximumf>, %72, %cst_27 [1] : vector<8x8xf32> to vector<8xf32>
    %74 = vector.shape_cast %73 : vector<8xf32> to vector<8x1xf32>
    %75 = vector.broadcast %74 : vector<8x1xf32> to vector<8x8xf32>
    %76 = arith.subf %72, %75 : vector<8x8xf32>
    %77 = math.exp %76 : vector<8x8xf32>
    %cst_28 = arith.constant dense<0.000000e+00> : vector<8xf32>
    %78 = vector.multi_reduction <add>, %77, %cst_28 [1] : vector<8x8xf32> to vector<8xf32>
    %79 = vector.shape_cast %78 : vector<8xf32> to vector<8x1xf32>
    %80 = vector.broadcast %79 : vector<8x1xf32> to vector<8x8xf32>
    %81 = arith.divf %77, %80 : vector<8x8xf32>
    %cst_29 = arith.constant dense<0.000000e+00> : vector<8x8xf32>
    %82 = tpu.matmul %81, %69, %cst_29 {dimension_numbers = #tpu.dot_dimension_numbers<[1], [0], [0], [1], [0, 0, 1, 1], [], []>} : vector<8x8xf32>, vector<8x8xf32>, vector<8x8xf32> -> vector<8x8xf32>
    %c0_30 = arith.constant 0 : index
    %c24 = arith.constant 24 : index
    %83 = vector.load %arg13[%c0_30, %c24] : memref<16x32xf32, #tpu.memory_space<vmem>>, vector<8x8xf32>
    tpu.vector_store %arg13[%c0_30, %c24], %82 {strides = array<i32>} : memref<16x32xf32, #tpu.memory_space<vmem>>, vector<8x8xf32>,
    %84 = vector.extract_strided_slice %13 {offsets = [8, 0], sizes = [8, 8], strides = [1, 1]} : vector<16x32xf32> to vector<8x8xf32>
    %85 = vector.extract_strided_slice %14 {offsets = [8, 0], sizes = [8, 8], strides = [1, 1]} : vector<16x32xf32> to vector<8x8xf32>
    %86 = vector.extract_strided_slice %15 {offsets = [8, 0], sizes = [8, 8], strides = [1, 1]} : vector<16x32xf32> to vector<8x8xf32>
    %cst_31 = arith.constant dense<0.000000e+00> : vector<8x8xf32>
    %87 = tpu.matmul %84, %85, %cst_31 {dimension_numbers = #tpu.dot_dimension_numbers<[1], [1], [0], [0], [0, 0, 1, 0], [], []>} : vector<8x8xf32>, vector<8x8xf32>, vector<8x8xf32> -> vector<8x8xf32>
    %cst_32 = arith.constant -1.000000e+06 : f32
    %88 = vector.broadcast %cst_32 : f32 to vector<8x8xf32>
    %89 = arith.select %6, %87, %88 : vector<8x8xi1>, vector<8x8xf32>
    %cst_33 = arith.constant dense<0xFF800000> : vector<8xf32>
    %90 = vector.multi_reduction <maximumf>, %89, %cst_33 [1] : vector<8x8xf32> to vector<8xf32>
    %91 = vector.shape_cast %90 : vector<8xf32> to vector<8x1xf32>
    %92 = vector.broadcast %91 : vector<8x1xf32> to vector<8x8xf32>
    %93 = arith.subf %89, %92 : vector<8x8xf32>
    %94 = math.exp %93 : vector<8x8xf32>
    %cst_34 = arith.constant dense<0.000000e+00> : vector<8xf32>
    %95 = vector.multi_reduction <add>, %94, %cst_34 [1] : vector<8x8xf32> to vector<8xf32>
    %96 = vector.shape_cast %95 : vector<8xf32> to vector<8x1xf32>
    %97 = vector.broadcast %96 : vector<8x1xf32> to vector<8x8xf32>
    %98 = arith.divf %94, %97 : vector<8x8xf32>
    %cst_35 = arith.constant dense<0.000000e+00> : vector<8x8xf32>
    %99 = tpu.matmul %98, %86, %cst_35 {dimension_numbers = #tpu.dot_dimension_numbers<[1], [0], [0], [1], [0, 0, 1, 1], [], []>} : vector<8x8xf32>, vector<8x8xf32>, vector<8x8xf32> -> vector<8x8xf32>
    %c8_36 = arith.constant 8 : index
    %c0_37 = arith.constant 0 : index
    %100 = vector.load %arg13[%c8_36, %c0_37] : memref<16x32xf32, #tpu.memory_space<vmem>>, vector<8x8xf32>
    tpu.vector_store %arg13[%c8_36, %c0_37], %99 {strides = array<i32>} : memref<16x32xf32, #tpu.memory_space<vmem>>, vector<8x8xf32>,
    %101 = vector.extract_strided_slice %13 {offsets = [8, 8], sizes = [8, 8], strides = [1, 1]} : vector<16x32xf32> to vector<8x8xf32>
    %102 = vector.extract_strided_slice %14 {offsets = [8, 8], sizes = [8, 8], strides = [1, 1]} : vector<16x32xf32> to vector<8x8xf32>
    %103 = vector.extract_strided_slice %15 {offsets = [8, 8], sizes = [8, 8], strides = [1, 1]} : vector<16x32xf32> to vector<8x8xf32>
    %cst_38 = arith.constant dense<0.000000e+00> : vector<8x8xf32>
    %104 = tpu.matmul %101, %102, %cst_38 {dimension_numbers = #tpu.dot_dimension_numbers<[1], [1], [0], [0], [0, 0, 1, 0], [], []>} : vector<8x8xf32>, vector<8x8xf32>, vector<8x8xf32> -> vector<8x8xf32>
    %cst_39 = arith.constant -1.000000e+06 : f32
    %105 = vector.broadcast %cst_39 : f32 to vector<8x8xf32>
    %106 = arith.select %6, %104, %105 : vector<8x8xi1>, vector<8x8xf32>
    %cst_40 = arith.constant dense<0xFF800000> : vector<8xf32>
    %107 = vector.multi_reduction <maximumf>, %106, %cst_40 [1] : vector<8x8xf32> to vector<8xf32>
    %108 = vector.shape_cast %107 : vector<8xf32> to vector<8x1xf32>
    %109 = vector.broadcast %108 : vector<8x1xf32> to vector<8x8xf32>
    %110 = arith.subf %106, %109 : vector<8x8xf32>
    %111 = math.exp %110 : vector<8x8xf32>
    %cst_41 = arith.constant dense<0.000000e+00> : vector<8xf32>
    %112 = vector.multi_reduction <add>, %111, %cst_41 [1] : vector<8x8xf32> to vector<8xf32>
    %113 = vector.shape_cast %112 : vector<8xf32> to vector<8x1xf32>
    %114 = vector.broadcast %113 : vector<8x1xf32> to vector<8x8xf32>
    %115 = arith.divf %111, %114 : vector<8x8xf32>
    %cst_42 = arith.constant dense<0.000000e+00> : vector<8x8xf32>
    %116 = tpu.matmul %115, %103, %cst_42 {dimension_numbers = #tpu.dot_dimension_numbers<[1], [0], [0], [1], [0, 0, 1, 1], [], []>} : vector<8x8xf32>, vector<8x8xf32>, vector<8x8xf32> -> vector<8x8xf32>
    %c8_43 = arith.constant 8 : index
    %c8_44 = arith.constant 8 : index
    %117 = vector.load %arg13[%c8_43, %c8_44] : memref<16x32xf32, #tpu.memory_space<vmem>>, vector<8x8xf32>
    tpu.vector_store %arg13[%c8_43, %c8_44], %116 {strides = array<i32>} : memref<16x32xf32, #tpu.memory_space<vmem>>, vector<8x8xf32>,
    %118 = vector.extract_strided_slice %13 {offsets = [8, 16], sizes = [8, 8], strides = [1, 1]} : vector<16x32xf32> to vector<8x8xf32>
    %119 = vector.extract_strided_slice %14 {offsets = [8, 16], sizes = [8, 8], strides = [1, 1]} : vector<16x32xf32> to vector<8x8xf32>
    %120 = vector.extract_strided_slice %15 {offsets = [8, 16], sizes = [8, 8], strides = [1, 1]} : vector<16x32xf32> to vector<8x8xf32>
    %cst_45 = arith.constant dense<0.000000e+00> : vector<8x8xf32>
    %121 = tpu.matmul %118, %119, %cst_45 {dimension_numbers = #tpu.dot_dimension_numbers<[1], [1], [0], [0], [0, 0, 1, 0], [], []>} : vector<8x8xf32>, vector<8x8xf32>, vector<8x8xf32> -> vector<8x8xf32>
    %cst_46 = arith.constant -1.000000e+06 : f32
    %122 = vector.broadcast %cst_46 : f32 to vector<8x8xf32>
    %123 = arith.select %6, %121, %122 : vector<8x8xi1>, vector<8x8xf32>
    %cst_47 = arith.constant dense<0xFF800000> : vector<8xf32>
    %124 = vector.multi_reduction <maximumf>, %123, %cst_47 [1] : vector<8x8xf32> to vector<8xf32>
    %125 = vector.shape_cast %124 : vector<8xf32> to vector<8x1xf32>
    %126 = vector.broadcast %125 : vector<8x1xf32> to vector<8x8xf32>
    %127 = arith.subf %123, %126 : vector<8x8xf32>
    %128 = math.exp %127 : vector<8x8xf32>
    %cst_48 = arith.constant dense<0.000000e+00> : vector<8xf32>
    %129 = vector.multi_reduction <add>, %128, %cst_48 [1] : vector<8x8xf32> to vector<8xf32>
    %130 = vector.shape_cast %129 : vector<8xf32> to vector<8x1xf32>
    %131 = vector.broadcast %130 : vector<8x1xf32> to vector<8x8xf32>
    %132 = arith.divf %128, %131 : vector<8x8xf32>
    %cst_49 = arith.constant dense<0.000000e+00> : vector<8x8xf32>
    %133 = tpu.matmul %132, %120, %cst_49 {dimension_numbers = #tpu.dot_dimension_numbers<[1], [0], [0], [1], [0, 0, 1, 1], [], []>} : vector<8x8xf32>, vector<8x8xf32>, vector<8x8xf32> -> vector<8x8xf32>
    %c8_50 = arith.constant 8 : index
    %c16_51 = arith.constant 16 : index
    %134 = vector.load %arg13[%c8_50, %c16_51] : memref<16x32xf32, #tpu.memory_space<vmem>>, vector<8x8xf32>
    tpu.vector_store %arg13[%c8_50, %c16_51], %133 {strides = array<i32>} : memref<16x32xf32, #tpu.memory_space<vmem>>, vector<8x8xf32>,
    %135 = vector.extract_strided_slice %13 {offsets = [8, 24], sizes = [8, 8], strides = [1, 1]} : vector<16x32xf32> to vector<8x8xf32>
    %136 = vector.extract_strided_slice %14 {offsets = [8, 24], sizes = [8, 8], strides = [1, 1]} : vector<16x32xf32> to vector<8x8xf32>
    %137 = vector.extract_strided_slice %15 {offsets = [8, 24], sizes = [8, 8], strides = [1, 1]} : vector<16x32xf32> to vector<8x8xf32>
    %cst_52 = arith.constant dense<0.000000e+00> : vector<8x8xf32>
    %138 = tpu.matmul %135, %136, %cst_52 {dimension_numbers = #tpu.dot_dimension_numbers<[1], [1], [0], [0], [0, 0, 1, 0], [], []>} : vector<8x8xf32>, vector<8x8xf32>, vector<8x8xf32> -> vector<8x8xf32>
    %cst_53 = arith.constant -1.000000e+06 : f32
    %139 = vector.broadcast %cst_53 : f32 to vector<8x8xf32>
    %140 = arith.select %6, %138, %139 : vector<8x8xi1>, vector<8x8xf32>
    %cst_54 = arith.constant dense<0xFF800000> : vector<8xf32>
    %141 = vector.multi_reduction <maximumf>, %140, %cst_54 [1] : vector<8x8xf32> to vector<8xf32>
    %142 = vector.shape_cast %141 : vector<8xf32> to vector<8x1xf32>
    %143 = vector.broadcast %142 : vector<8x1xf32> to vector<8x8xf32>
    %144 = arith.subf %140, %143 : vector<8x8xf32>
    %145 = math.exp %144 : vector<8x8xf32>
    %cst_55 = arith.constant dense<0.000000e+00> : vector<8xf32>
    %146 = vector.multi_reduction <add>, %145, %cst_55 [1] : vector<8x8xf32> to vector<8xf32>
    %147 = vector.shape_cast %146 : vector<8xf32> to vector<8x1xf32>
    %148 = vector.broadcast %147 : vector<8x1xf32> to vector<8x8xf32>
    %149 = arith.divf %145, %148 : vector<8x8xf32>
    %cst_56 = arith.constant dense<0.000000e+00> : vector<8x8xf32>
    %150 = tpu.matmul %149, %137, %cst_56 {dimension_numbers = #tpu.dot_dimension_numbers<[1], [0], [0], [1], [0, 0, 1, 1], [], []>} : vector<8x8xf32>, vector<8x8xf32>, vector<8x8xf32> -> vector<8x8xf32>
    %c8_57 = arith.constant 8 : index
    %c24_58 = arith.constant 24 : index
    %151 = vector.load %arg13[%c8_57, %c24_58] : memref<16x32xf32, #tpu.memory_space<vmem>>, vector<8x8xf32>
    tpu.vector_store %arg13[%c8_57, %c24_58], %150 {strides = array<i32>} : memref<16x32xf32, #tpu.memory_space<vmem>>, vector<8x8xf32>,
    %c0_59 = arith.constant 0 : index
    %c0_60 = arith.constant 0 : index
    %152 = vector.load %arg13[%c0_59, %c0_60] : memref<16x32xf32, #tpu.memory_space<vmem>>, vector<16x32xf32>
    %c0_61 = arith.constant 0 : index
    %c0_62 = arith.constant 0 : index
    %c0_63 = arith.constant 0 : index
    %153 = vector.load %arg3[%c0_61, %c0_62, %c0_63] : memref<2x32x32xf32, #tpu.memory_space<vmem>>, vector<1x32x32xf32>
    %154 = vector.shape_cast %153 : vector<1x32x32xf32> to vector<32x32xf32>
    %cst_64 = arith.constant dense<0.000000e+00> : vector<16x32xf32>
    %155 = tpu.matmul %152, %154, %cst_64 {dimension_numbers = #tpu.dot_dimension_numbers<[1], [0], [0], [1], [0, 0, 1, 1], [], []>} : vector<16x32xf32>, vector<32x32xf32>, vector<16x32xf32> -> vector<16x32xf32>
    %156 = arith.addf %7, %155 : vector<16x32xf32>
    %c0_65 = arith.constant 0 : index
    %c0_66 = arith.constant 0 : index
    %c0_67 = arith.constant 0 : index
    %157 = vector.load %arg4[%c0_65, %c0_66, %c0_67] : memref<2x1x32xf32, #tpu.memory_space<vmem>>, vector<1x1x32xf32>
    %158 = vector.shape_cast %157 : vector<1x1x32xf32> to vector<1x32xf32>
    %c0_68 = arith.constant 0 : index
    %c0_69 = arith.constant 0 : index
    %c0_70 = arith.constant 0 : index
    %159 = vector.load %arg5[%c0_68, %c0_69, %c0_70] : memref<2x1x32xf32, #tpu.memory_space<vmem>>, vector<1x1x32xf32>
    %160 = vector.shape_cast %159 : vector<1x1x32xf32> to vector<1x32xf32>
    %cst_71 = arith.constant dense<0.000000e+00> : vector<16xf32>
    %161 = vector.multi_reduction <add>, %156, %cst_71 [1] : vector<16x32xf32> to vector<16xf32>
    %162 = vector.shape_cast %161 : vector<16xf32> to vector<16x1xf32>
    %cst_72 = arith.constant 3.200000e+01 : f32
    %163 = vector.broadcast %cst_72 : f32 to vector<16x1xf32>
    %164 = arith.divf %162, %163 : vector<16x1xf32>
    %165 = arith.mulf %156, %156 : vector<16x32xf32>
    %cst_73 = arith.constant dense<0.000000e+00> : vector<16xf32>
    %166 = vector.multi_reduction <add>, %165, %cst_73 [1] : vector<16x32xf32> to vector<16xf32>
    %167 = vector.shape_cast %166 : vector<16xf32> to vector<16x1xf32>
    %cst_74 = arith.constant 3.200000e+01 : f32
    %168 = vector.broadcast %cst_74 : f32 to vector<16x1xf32>
    %169 = arith.divf %167, %168 : vector<16x1xf32>
    %170 = arith.mulf %164, %164 : vector<16x1xf32>
    %171 = arith.subf %169, %170 : vector<16x1xf32>
    %172 = vector.broadcast %164 : vector<16x1xf32> to vector<16x32xf32>
    %173 = arith.subf %156, %172 : vector<16x32xf32>
    %cst_75 = arith.constant 9.99999974E-6 : f32
    %174 = vector.broadcast %cst_75 : f32 to vector<16x1xf32>
    %175 = arith.addf %171, %174 : vector<16x1xf32>
    %176 = math.rsqrt %175 : vector<16x1xf32>
    %177 = vector.broadcast %176 : vector<16x1xf32> to vector<16x32xf32>
    %178 = arith.mulf %173, %177 : vector<16x32xf32>
    %179 = vector.broadcast %158 : vector<1x32xf32> to vector<16x32xf32>
    %180 = arith.mulf %178, %179 : vector<16x32xf32>
    %181 = vector.broadcast %160 : vector<1x32xf32> to vector<16x32xf32>
    %182 = arith.addf %180, %181 : vector<16x32xf32>
    %c0_76 = arith.constant 0 : index
    %c0_77 = arith.constant 0 : index
    %c0_78 = arith.constant 0 : index
    %183 = vector.load %arg6[%c0_76, %c0_77, %c0_78] : memref<2x32x64xf32, #tpu.memory_space<vmem>>, vector<1x32x64xf32>
    %184 = vector.shape_cast %183 : vector<1x32x64xf32> to vector<32x64xf32>
    %cst_79 = arith.constant dense<0.000000e+00> : vector<16x64xf32>
    %185 = tpu.matmul %182, %184, %cst_79 {dimension_numbers = #tpu.dot_dimension_numbers<[1], [0], [0], [1], [0, 0, 1, 1], [], []>} : vector<16x32xf32>, vector<32x64xf32>, vector<16x64xf32> -> vector<16x64xf32>
    %c0_80 = arith.constant 0 : index
    %c0_81 = arith.constant 0 : index
    %c0_82 = arith.constant 0 : index
    %186 = vector.load %arg7[%c0_80, %c0_81, %c0_82] : memref<2x1x64xf32, #tpu.memory_space<vmem>>, vector<1x1x64xf32>
    %187 = vector.shape_cast %186 : vector<1x1x64xf32> to vector<1x64xf32>
    %188 = vector.broadcast %187 : vector<1x64xf32> to vector<16x64xf32>
    %189 = arith.addf %185, %188 : vector<16x64xf32>
    %cst_83 = arith.constant 0.000000e+00 : f32
    %190 = vector.broadcast %cst_83 : f32 to vector<16x64xf32>
    %191 = arith.maximumf %189, %190 : vector<16x64xf32>
    %c0_84 = arith.constant 0 : index
    %c0_85 = arith.constant 0 : index
    %c0_86 = arith.constant 0 : index
    %192 = vector.load %arg8[%c0_84, %c0_85, %c0_86] : memref<2x64x32xf32, #tpu.memory_space<vmem>>, vector<1x64x32xf32>
    %193 = vector.shape_cast %192 : vector<1x64x32xf32> to vector<64x32xf32>
    %cst_87 = arith.constant dense<0.000000e+00> : vector<16x32xf32>
    %194 = tpu.matmul %191, %193, %cst_87 {dimension_numbers = #tpu.dot_dimension_numbers<[1], [0], [0], [1], [0, 0, 1, 1], [], []>} : vector<16x64xf32>, vector<64x32xf32>, vector<16x32xf32> -> vector<16x32xf32>
    %c0_88 = arith.constant 0 : index
    %c0_89 = arith.constant 0 : index
    %c0_90 = arith.constant 0 : index
    %195 = vector.load %arg9[%c0_88, %c0_89, %c0_90] : memref<2x1x32xf32, #tpu.memory_space<vmem>>, vector<1x1x32xf32>
    %196 = vector.shape_cast %195 : vector<1x1x32xf32> to vector<1x32xf32>
    %197 = vector.broadcast %196 : vector<1x32xf32> to vector<16x32xf32>
    %198 = arith.addf %194, %197 : vector<16x32xf32>
    %199 = arith.addf %182, %198 : vector<16x32xf32>
    %c0_91 = arith.constant 0 : index
    %c0_92 = arith.constant 0 : index
    %c0_93 = arith.constant 0 : index
    %200 = vector.load %arg10[%c0_91, %c0_92, %c0_93] : memref<2x1x32xf32, #tpu.memory_space<vmem>>, vector<1x1x32xf32>
    %201 = vector.shape_cast %200 : vector<1x1x32xf32> to vector<1x32xf32>
    %c0_94 = arith.constant 0 : index
    %c0_95 = arith.constant 0 : index
    %c0_96 = arith.constant 0 : index
    %202 = vector.load %arg11[%c0_94, %c0_95, %c0_96] : memref<2x1x32xf32, #tpu.memory_space<vmem>>, vector<1x1x32xf32>
    %203 = vector.shape_cast %202 : vector<1x1x32xf32> to vector<1x32xf32>
    %cst_97 = arith.constant dense<0.000000e+00> : vector<16xf32>
    %204 = vector.multi_reduction <add>, %199, %cst_97 [1] : vector<16x32xf32> to vector<16xf32>
    %205 = vector.shape_cast %204 : vector<16xf32> to vector<16x1xf32>
    %cst_98 = arith.constant 3.200000e+01 : f32
    %206 = vector.broadcast %cst_98 : f32 to vector<16x1xf32>
    %207 = arith.divf %205, %206 : vector<16x1xf32>
    %208 = arith.mulf %199, %199 : vector<16x32xf32>
    %cst_99 = arith.constant dense<0.000000e+00> : vector<16xf32>
    %209 = vector.multi_reduction <add>, %208, %cst_99 [1] : vector<16x32xf32> to vector<16xf32>
    %210 = vector.shape_cast %209 : vector<16xf32> to vector<16x1xf32>
    %cst_100 = arith.constant 3.200000e+01 : f32
    %211 = vector.broadcast %cst_100 : f32 to vector<16x1xf32>
    %212 = arith.divf %210, %211 : vector<16x1xf32>
    %213 = arith.mulf %207, %207 : vector<16x1xf32>
    %214 = arith.subf %212, %213 : vector<16x1xf32>
    %215 = vector.broadcast %207 : vector<16x1xf32> to vector<16x32xf32>
    %216 = arith.subf %199, %215 : vector<16x32xf32>
    %cst_101 = arith.constant 9.99999974E-6 : f32
    %217 = vector.broadcast %cst_101 : f32 to vector<16x1xf32>
    %218 = arith.addf %214, %217 : vector<16x1xf32>
    %219 = math.rsqrt %218 : vector<16x1xf32>
    %220 = vector.broadcast %219 : vector<16x1xf32> to vector<16x32xf32>
    %221 = arith.mulf %216, %220 : vector<16x32xf32>
    %222 = vector.broadcast %201 : vector<1x32xf32> to vector<16x32xf32>
    %223 = arith.mulf %221, %222 : vector<16x32xf32>
    %224 = vector.broadcast %203 : vector<1x32xf32> to vector<16x32xf32>
    %225 = arith.addf %223, %224 : vector<16x32xf32>
    %c1_102 = arith.constant 1 : index
    %c0_103 = arith.constant 0 : index
    %c0_104 = arith.constant 0 : index
    %226 = vector.load %arg2[%c1_102, %c0_103, %c0_104] : memref<2x32x96xf32, #tpu.memory_space<vmem>>, vector<1x32x96xf32>
    %227 = vector.shape_cast %226 : vector<1x32x96xf32> to vector<32x96xf32>
    %cst_105 = arith.constant dense<0.000000e+00> : vector<16x96xf32>
    %228 = tpu.matmul %225, %227, %cst_105 {dimension_numbers = #tpu.dot_dimension_numbers<[1], [0], [0], [1], [0, 0, 1, 1], [], []>} : vector<16x32xf32>, vector<32x96xf32>, vector<16x96xf32> -> vector<16x96xf32>
    %229 = vector.extract_strided_slice %228 {offsets = [0, 0], sizes = [16, 32], strides = [1, 1]} : vector<16x96xf32> to vector<16x32xf32>
    %cst_106 = arith.constant 0.353553385 : f32
    %230 = vector.broadcast %cst_106 : f32 to vector<16x32xf32>
    %231 = arith.mulf %229, %230 : vector<16x32xf32>
    %232 = vector.extract_strided_slice %228 {offsets = [0, 32], sizes = [16, 32], strides = [1, 1]} : vector<16x96xf32> to vector<16x32xf32>
    %233 = vector.extract_strided_slice %228 {offsets = [0, 64], sizes = [16, 32], strides = [1, 1]} : vector<16x96xf32> to vector<16x32xf32>
    %234 = vector.extract_strided_slice %231 {offsets = [0, 0], sizes = [8, 8], strides = [1, 1]} : vector<16x32xf32> to vector<8x8xf32>
    %235 = vector.extract_strided_slice %232 {offsets = [0, 0], sizes = [8, 8], strides = [1, 1]} : vector<16x32xf32> to vector<8x8xf32>
    %236 = vector.extract_strided_slice %233 {offsets = [0, 0], sizes = [8, 8], strides = [1, 1]} : vector<16x32xf32> to vector<8x8xf32>
    %cst_107 = arith.constant dense<0.000000e+00> : vector<8x8xf32>
    %237 = tpu.matmul %234, %235, %cst_107 {dimension_numbers = #tpu.dot_dimension_numbers<[1], [1], [0], [0], [0, 0, 1, 0], [], []>} : vector<8x8xf32>, vector<8x8xf32>, vector<8x8xf32> -> vector<8x8xf32>
    %cst_108 = arith.constant -1.000000e+06 : f32
    %238 = vector.broadcast %cst_108 : f32 to vector<8x8xf32>
    %239 = arith.select %3, %237, %238 : vector<8x8xi1>, vector<8x8xf32>
    %cst_109 = arith.constant dense<0xFF800000> : vector<8xf32>
    %240 = vector.multi_reduction <maximumf>, %239, %cst_109 [1] : vector<8x8xf32> to vector<8xf32>
    %241 = vector.shape_cast %240 : vector<8xf32> to vector<8x1xf32>
    %242 = vector.broadcast %241 : vector<8x1xf32> to vector<8x8xf32>
    %243 = arith.subf %239, %242 : vector<8x8xf32>
    %244 = math.exp %243 : vector<8x8xf32>
    %cst_110 = arith.constant dense<0.000000e+00> : vector<8xf32>
    %245 = vector.multi_reduction <add>, %244, %cst_110 [1] : vector<8x8xf32> to vector<8xf32>
    %246 = vector.shape_cast %245 : vector<8xf32> to vector<8x1xf32>
    %247 = vector.broadcast %246 : vector<8x1xf32> to vector<8x8xf32>
    %248 = arith.divf %244, %247 : vector<8x8xf32>
    %cst_111 = arith.constant dense<0.000000e+00> : vector<8x8xf32>
    %249 = tpu.matmul %248, %236, %cst_111 {dimension_numbers = #tpu.dot_dimension_numbers<[1], [0], [0], [1], [0, 0, 1, 1], [], []>} : vector<8x8xf32>, vector<8x8xf32>, vector<8x8xf32> -> vector<8x8xf32>
    %c0_112 = arith.constant 0 : index
    %c0_113 = arith.constant 0 : index
    %250 = vector.load %arg13[%c0_112, %c0_113] : memref<16x32xf32, #tpu.memory_space<vmem>>, vector<8x8xf32>
    tpu.vector_store %arg13[%c0_112, %c0_113], %249 {strides = array<i32>} : memref<16x32xf32, #tpu.memory_space<vmem>>, vector<8x8xf32>,
    %251 = vector.extract_strided_slice %231 {offsets = [0, 8], sizes = [8, 8], strides = [1, 1]} : vector<16x32xf32> to vector<8x8xf32>
    %252 = vector.extract_strided_slice %232 {offsets = [0, 8], sizes = [8, 8], strides = [1, 1]} : vector<16x32xf32> to vector<8x8xf32>
    %253 = vector.extract_strided_slice %233 {offsets = [0, 8], sizes = [8, 8], strides = [1, 1]} : vector<16x32xf32> to vector<8x8xf32>
    %cst_114 = arith.constant dense<0.000000e+00> : vector<8x8xf32>
    %254 = tpu.matmul %251, %252, %cst_114 {dimension_numbers = #tpu.dot_dimension_numbers<[1], [1], [0], [0], [0, 0, 1, 0], [], []>} : vector<8x8xf32>, vector<8x8xf32>, vector<8x8xf32> -> vector<8x8xf32>
    %cst_115 = arith.constant -1.000000e+06 : f32
    %255 = vector.broadcast %cst_115 : f32 to vector<8x8xf32>
    %256 = arith.select %3, %254, %255 : vector<8x8xi1>, vector<8x8xf32>
    %cst_116 = arith.constant dense<0xFF800000> : vector<8xf32>
    %257 = vector.multi_reduction <maximumf>, %256, %cst_116 [1] : vector<8x8xf32> to vector<8xf32>
    %258 = vector.shape_cast %257 : vector<8xf32> to vector<8x1xf32>
    %259 = vector.broadcast %258 : vector<8x1xf32> to vector<8x8xf32>
    %260 = arith.subf %256, %259 : vector<8x8xf32>
    %261 = math.exp %260 : vector<8x8xf32>
    %cst_117 = arith.constant dense<0.000000e+00> : vector<8xf32>
    %262 = vector.multi_reduction <add>, %261, %cst_117 [1] : vector<8x8xf32> to vector<8xf32>
    %263 = vector.shape_cast %262 : vector<8xf32> to vector<8x1xf32>
    %264 = vector.broadcast %263 : vector<8x1xf32> to vector<8x8xf32>
    %265 = arith.divf %261, %264 : vector<8x8xf32>
    %cst_118 = arith.constant dense<0.000000e+00> : vector<8x8xf32>
    %266 = tpu.matmul %265, %253, %cst_118 {dimension_numbers = #tpu.dot_dimension_numbers<[1], [0], [0], [1], [0, 0, 1, 1], [], []>} : vector<8x8xf32>, vector<8x8xf32>, vector<8x8xf32> -> vector<8x8xf32>
    %c0_119 = arith.constant 0 : index
    %c8_120 = arith.constant 8 : index
    %267 = vector.load %arg13[%c0_119, %c8_120] : memref<16x32xf32, #tpu.memory_space<vmem>>, vector<8x8xf32>
    tpu.vector_store %arg13[%c0_119, %c8_120], %266 {strides = array<i32>} : memref<16x32xf32, #tpu.memory_space<vmem>>, vector<8x8xf32>,
    %268 = vector.extract_strided_slice %231 {offsets = [0, 16], sizes = [8, 8], strides = [1, 1]} : vector<16x32xf32> to vector<8x8xf32>
    %269 = vector.extract_strided_slice %232 {offsets = [0, 16], sizes = [8, 8], strides = [1, 1]} : vector<16x32xf32> to vector<8x8xf32>
    %270 = vector.extract_strided_slice %233 {offsets = [0, 16], sizes = [8, 8], strides = [1, 1]} : vector<16x32xf32> to vector<8x8xf32>
    %cst_121 = arith.constant dense<0.000000e+00> : vector<8x8xf32>
    %271 = tpu.matmul %268, %269, %cst_121 {dimension_numbers = #tpu.dot_dimension_numbers<[1], [1], [0], [0], [0, 0, 1, 0], [], []>} : vector<8x8xf32>, vector<8x8xf32>, vector<8x8xf32> -> vector<8x8xf32>
    %cst_122 = arith.constant -1.000000e+06 : f32
    %272 = vector.broadcast %cst_122 : f32 to vector<8x8xf32>
    %273 = arith.select %3, %271, %272 : vector<8x8xi1>, vector<8x8xf32>
    %cst_123 = arith.constant dense<0xFF800000> : vector<8xf32>
    %274 = vector.multi_reduction <maximumf>, %273, %cst_123 [1] : vector<8x8xf32> to vector<8xf32>
    %275 = vector.shape_cast %274 : vector<8xf32> to vector<8x1xf32>
    %276 = vector.broadcast %275 : vector<8x1xf32> to vector<8x8xf32>
    %277 = arith.subf %273, %276 : vector<8x8xf32>
    %278 = math.exp %277 : vector<8x8xf32>
    %cst_124 = arith.constant dense<0.000000e+00> : vector<8xf32>
    %279 = vector.multi_reduction <add>, %278, %cst_124 [1] : vector<8x8xf32> to vector<8xf32>
    %280 = vector.shape_cast %279 : vector<8xf32> to vector<8x1xf32>
    %281 = vector.broadcast %280 : vector<8x1xf32> to vector<8x8xf32>
    %282 = arith.divf %278, %281 : vector<8x8xf32>
    %cst_125 = arith.constant dense<0.000000e+00> : vector<8x8xf32>
    %283 = tpu.matmul %282, %270, %cst_125 {dimension_numbers = #tpu.dot_dimension_numbers<[1], [0], [0], [1], [0, 0, 1, 1], [], []>} : vector<8x8xf32>, vector<8x8xf32>, vector<8x8xf32> -> vector<8x8xf32>
    %c0_126 = arith.constant 0 : index
    %c16_127 = arith.constant 16 : index
    %284 = vector.load %arg13[%c0_126, %c16_127] : memref<16x32xf32, #tpu.memory_space<vmem>>, vector<8x8xf32>
    tpu.vector_store %arg13[%c0_126, %c16_127], %283 {strides = array<i32>} : memref<16x32xf32, #tpu.memory_space<vmem>>, vector<8x8xf32>,
    %285 = vector.extract_strided_slice %231 {offsets = [0, 24], sizes = [8, 8], strides = [1, 1]} : vector<16x32xf32> to vector<8x8xf32>
    %286 = vector.extract_strided_slice %232 {offsets = [0, 24], sizes = [8, 8], strides = [1, 1]} : vector<16x32xf32> to vector<8x8xf32>
    %287 = vector.extract_strided_slice %233 {offsets = [0, 24], sizes = [8, 8], strides = [1, 1]} : vector<16x32xf32> to vector<8x8xf32>
    %cst_128 = arith.constant dense<0.000000e+00> : vector<8x8xf32>
    %288 = tpu.matmul %285, %286, %cst_128 {dimension_numbers = #tpu.dot_dimension_numbers<[1], [1], [0], [0], [0, 0, 1, 0], [], []>} : vector<8x8xf32>, vector<8x8xf32>, vector<8x8xf32> -> vector<8x8xf32>
    %cst_129 = arith.constant -1.000000e+06 : f32
    %289 = vector.broadcast %cst_129 : f32 to vector<8x8xf32>
    %290 = arith.select %3, %288, %289 : vector<8x8xi1>, vector<8x8xf32>
    %cst_130 = arith.constant dense<0xFF800000> : vector<8xf32>
    %291 = vector.multi_reduction <maximumf>, %290, %cst_130 [1] : vector<8x8xf32> to vector<8xf32>
    %292 = vector.shape_cast %291 : vector<8xf32> to vector<8x1xf32>
    %293 = vector.broadcast %292 : vector<8x1xf32> to vector<8x8xf32>
    %294 = arith.subf %290, %293 : vector<8x8xf32>
    %295 = math.exp %294 : vector<8x8xf32>
    %cst_131 = arith.constant dense<0.000000e+00> : vector<8xf32>
    %296 = vector.multi_reduction <add>, %295, %cst_131 [1] : vector<8x8xf32> to vector<8xf32>
    %297 = vector.shape_cast %296 : vector<8xf32> to vector<8x1xf32>
    %298 = vector.broadcast %297 : vector<8x1xf32> to vector<8x8xf32>
    %299 = arith.divf %295, %298 : vector<8x8xf32>
    %cst_132 = arith.constant dense<0.000000e+00> : vector<8x8xf32>
    %300 = tpu.matmul %299, %287, %cst_132 {dimension_numbers = #tpu.dot_dimension_numbers<[1], [0], [0], [1], [0, 0, 1, 1], [], []>} : vector<8x8xf32>, vector<8x8xf32>, vector<8x8xf32> -> vector<8x8xf32>
    %c0_133 = arith.constant 0 : index
    %c24_134 = arith.constant 24 : index
    %301 = vector.load %arg13[%c0_133, %c24_134] : memref<16x32xf32, #tpu.memory_space<vmem>>, vector<8x8xf32>
    tpu.vector_store %arg13[%c0_133, %c24_134], %300 {strides = array<i32>} : memref<16x32xf32, #tpu.memory_space<vmem>>, vector<8x8xf32>,
    %302 = vector.extract_strided_slice %231 {offsets = [8, 0], sizes = [8, 8], strides = [1, 1]} : vector<16x32xf32> to vector<8x8xf32>
    %303 = vector.extract_strided_slice %232 {offsets = [8, 0], sizes = [8, 8], strides = [1, 1]} : vector<16x32xf32> to vector<8x8xf32>
    %304 = vector.extract_strided_slice %233 {offsets = [8, 0], sizes = [8, 8], strides = [1, 1]} : vector<16x32xf32> to vector<8x8xf32>
    %cst_135 = arith.constant dense<0.000000e+00> : vector<8x8xf32>
    %305 = tpu.matmul %302, %303, %cst_135 {dimension_numbers = #tpu.dot_dimension_numbers<[1], [1], [0], [0], [0, 0, 1, 0], [], []>} : vector<8x8xf32>, vector<8x8xf32>, vector<8x8xf32> -> vector<8x8xf32>
    %cst_136 = arith.constant -1.000000e+06 : f32
    %306 = vector.broadcast %cst_136 : f32 to vector<8x8xf32>
    %307 = arith.select %6, %305, %306 : vector<8x8xi1>, vector<8x8xf32>
    %cst_137 = arith.constant dense<0xFF800000> : vector<8xf32>
    %308 = vector.multi_reduction <maximumf>, %307, %cst_137 [1] : vector<8x8xf32> to vector<8xf32>
    %309 = vector.shape_cast %308 : vector<8xf32> to vector<8x1xf32>
    %310 = vector.broadcast %309 : vector<8x1xf32> to vector<8x8xf32>
    %311 = arith.subf %307, %310 : vector<8x8xf32>
    %312 = math.exp %311 : vector<8x8xf32>
    %cst_138 = arith.constant dense<0.000000e+00> : vector<8xf32>
    %313 = vector.multi_reduction <add>, %312, %cst_138 [1] : vector<8x8xf32> to vector<8xf32>
    %314 = vector.shape_cast %313 : vector<8xf32> to vector<8x1xf32>
    %315 = vector.broadcast %314 : vector<8x1xf32> to vector<8x8xf32>
    %316 = arith.divf %312, %315 : vector<8x8xf32>
    %cst_139 = arith.constant dense<0.000000e+00> : vector<8x8xf32>
    %317 = tpu.matmul %316, %304, %cst_139 {dimension_numbers = #tpu.dot_dimension_numbers<[1], [0], [0], [1], [0, 0, 1, 1], [], []>} : vector<8x8xf32>, vector<8x8xf32>, vector<8x8xf32> -> vector<8x8xf32>
    %c8_140 = arith.constant 8 : index
    %c0_141 = arith.constant 0 : index
    %318 = vector.load %arg13[%c8_140, %c0_141] : memref<16x32xf32, #tpu.memory_space<vmem>>, vector<8x8xf32>
    tpu.vector_store %arg13[%c8_140, %c0_141], %317 {strides = array<i32>} : memref<16x32xf32, #tpu.memory_space<vmem>>, vector<8x8xf32>,
    %319 = vector.extract_strided_slice %231 {offsets = [8, 8], sizes = [8, 8], strides = [1, 1]} : vector<16x32xf32> to vector<8x8xf32>
    %320 = vector.extract_strided_slice %232 {offsets = [8, 8], sizes = [8, 8], strides = [1, 1]} : vector<16x32xf32> to vector<8x8xf32>
    %321 = vector.extract_strided_slice %233 {offsets = [8, 8], sizes = [8, 8], strides = [1, 1]} : vector<16x32xf32> to vector<8x8xf32>
    %cst_142 = arith.constant dense<0.000000e+00> : vector<8x8xf32>
    %322 = tpu.matmul %319, %320, %cst_142 {dimension_numbers = #tpu.dot_dimension_numbers<[1], [1], [0], [0], [0, 0, 1, 0], [], []>} : vector<8x8xf32>, vector<8x8xf32>, vector<8x8xf32> -> vector<8x8xf32>
    %cst_143 = arith.constant -1.000000e+06 : f32
    %323 = vector.broadcast %cst_143 : f32 to vector<8x8xf32>
    %324 = arith.select %6, %322, %323 : vector<8x8xi1>, vector<8x8xf32>
    %cst_144 = arith.constant dense<0xFF800000> : vector<8xf32>
    %325 = vector.multi_reduction <maximumf>, %324, %cst_144 [1] : vector<8x8xf32> to vector<8xf32>
    %326 = vector.shape_cast %325 : vector<8xf32> to vector<8x1xf32>
    %327 = vector.broadcast %326 : vector<8x1xf32> to vector<8x8xf32>
    %328 = arith.subf %324, %327 : vector<8x8xf32>
    %329 = math.exp %328 : vector<8x8xf32>
    %cst_145 = arith.constant dense<0.000000e+00> : vector<8xf32>
    %330 = vector.multi_reduction <add>, %329, %cst_145 [1] : vector<8x8xf32> to vector<8xf32>
    %331 = vector.shape_cast %330 : vector<8xf32> to vector<8x1xf32>
    %332 = vector.broadcast %331 : vector<8x1xf32> to vector<8x8xf32>
    %333 = arith.divf %329, %332 : vector<8x8xf32>
    %cst_146 = arith.constant dense<0.000000e+00> : vector<8x8xf32>
    %334 = tpu.matmul %333, %321, %cst_146 {dimension_numbers = #tpu.dot_dimension_numbers<[1], [0], [0], [1], [0, 0, 1, 1], [], []>} : vector<8x8xf32>, vector<8x8xf32>, vector<8x8xf32> -> vector<8x8xf32>
    %c8_147 = arith.constant 8 : index
    %c8_148 = arith.constant 8 : index
    %335 = vector.load %arg13[%c8_147, %c8_148] : memref<16x32xf32, #tpu.memory_space<vmem>>, vector<8x8xf32>
    tpu.vector_store %arg13[%c8_147, %c8_148], %334 {strides = array<i32>} : memref<16x32xf32, #tpu.memory_space<vmem>>, vector<8x8xf32>,
    %336 = vector.extract_strided_slice %231 {offsets = [8, 16], sizes = [8, 8], strides = [1, 1]} : vector<16x32xf32> to vector<8x8xf32>
    %337 = vector.extract_strided_slice %232 {offsets = [8, 16], sizes = [8, 8], strides = [1, 1]} : vector<16x32xf32> to vector<8x8xf32>
    %338 = vector.extract_strided_slice %233 {offsets = [8, 16], sizes = [8, 8], strides = [1, 1]} : vector<16x32xf32> to vector<8x8xf32>
    %cst_149 = arith.constant dense<0.000000e+00> : vector<8x8xf32>
    %339 = tpu.matmul %336, %337, %cst_149 {dimension_numbers = #tpu.dot_dimension_numbers<[1], [1], [0], [0], [0, 0, 1, 0], [], []>} : vector<8x8xf32>, vector<8x8xf32>, vector<8x8xf32> -> vector<8x8xf32>
    %cst_150 = arith.constant -1.000000e+06 : f32
    %340 = vector.broadcast %cst_150 : f32 to vector<8x8xf32>
    %341 = arith.select %6, %339, %340 : vector<8x8xi1>, vector<8x8xf32>
    %cst_151 = arith.constant dense<0xFF800000> : vector<8xf32>
    %342 = vector.multi_reduction <maximumf>, %341, %cst_151 [1] : vector<8x8xf32> to vector<8xf32>
    %343 = vector.shape_cast %342 : vector<8xf32> to vector<8x1xf32>
    %344 = vector.broadcast %343 : vector<8x1xf32> to vector<8x8xf32>
    %345 = arith.subf %341, %344 : vector<8x8xf32>
    %346 = math.exp %345 : vector<8x8xf32>
    %cst_152 = arith.constant dense<0.000000e+00> : vector<8xf32>
    %347 = vector.multi_reduction <add>, %346, %cst_152 [1] : vector<8x8xf32> to vector<8xf32>
    %348 = vector.shape_cast %347 : vector<8xf32> to vector<8x1xf32>
    %349 = vector.broadcast %348 : vector<8x1xf32> to vector<8x8xf32>
    %350 = arith.divf %346, %349 : vector<8x8xf32>
    %cst_153 = arith.constant dense<0.000000e+00> : vector<8x8xf32>
    %351 = tpu.matmul %350, %338, %cst_153 {dimension_numbers = #tpu.dot_dimension_numbers<[1], [0], [0], [1], [0, 0, 1, 1], [], []>} : vector<8x8xf32>, vector<8x8xf32>, vector<8x8xf32> -> vector<8x8xf32>
    %c8_154 = arith.constant 8 : index
    %c16_155 = arith.constant 16 : index
    %352 = vector.load %arg13[%c8_154, %c16_155] : memref<16x32xf32, #tpu.memory_space<vmem>>, vector<8x8xf32>
    tpu.vector_store %arg13[%c8_154, %c16_155], %351 {strides = array<i32>} : memref<16x32xf32, #tpu.memory_space<vmem>>, vector<8x8xf32>,
    %353 = vector.extract_strided_slice %231 {offsets = [8, 24], sizes = [8, 8], strides = [1, 1]} : vector<16x32xf32> to vector<8x8xf32>
    %354 = vector.extract_strided_slice %232 {offsets = [8, 24], sizes = [8, 8], strides = [1, 1]} : vector<16x32xf32> to vector<8x8xf32>
    %355 = vector.extract_strided_slice %233 {offsets = [8, 24], sizes = [8, 8], strides = [1, 1]} : vector<16x32xf32> to vector<8x8xf32>
    %cst_156 = arith.constant dense<0.000000e+00> : vector<8x8xf32>
    %356 = tpu.matmul %353, %354, %cst_156 {dimension_numbers = #tpu.dot_dimension_numbers<[1], [1], [0], [0], [0, 0, 1, 0], [], []>} : vector<8x8xf32>, vector<8x8xf32>, vector<8x8xf32> -> vector<8x8xf32>
    %cst_157 = arith.constant -1.000000e+06 : f32
    %357 = vector.broadcast %cst_157 : f32 to vector<8x8xf32>
    %358 = arith.select %6, %356, %357 : vector<8x8xi1>, vector<8x8xf32>
    %cst_158 = arith.constant dense<0xFF800000> : vector<8xf32>
    %359 = vector.multi_reduction <maximumf>, %358, %cst_158 [1] : vector<8x8xf32> to vector<8xf32>
    %360 = vector.shape_cast %359 : vector<8xf32> to vector<8x1xf32>
    %361 = vector.broadcast %360 : vector<8x1xf32> to vector<8x8xf32>
    %362 = arith.subf %358, %361 : vector<8x8xf32>
    %363 = math.exp %362 : vector<8x8xf32>
    %cst_159 = arith.constant dense<0.000000e+00> : vector<8xf32>
    %364 = vector.multi_reduction <add>, %363, %cst_159 [1] : vector<8x8xf32> to vector<8xf32>
    %365 = vector.shape_cast %364 : vector<8xf32> to vector<8x1xf32>
    %366 = vector.broadcast %365 : vector<8x1xf32> to vector<8x8xf32>
    %367 = arith.divf %363, %366 : vector<8x8xf32>
    %cst_160 = arith.constant dense<0.000000e+00> : vector<8x8xf32>
    %368 = tpu.matmul %367, %355, %cst_160 {dimension_numbers = #tpu.dot_dimension_numbers<[1], [0], [0], [1], [0, 0, 1, 1], [], []>} : vector<8x8xf32>, vector<8x8xf32>, vector<8x8xf32> -> vector<8x8xf32>
    %c8_161 = arith.constant 8 : index
    %c24_162 = arith.constant 24 : index
    %369 = vector.load %arg13[%c8_161, %c24_162] : memref<16x32xf32, #tpu.memory_space<vmem>>, vector<8x8xf32>
    tpu.vector_store %arg13[%c8_161, %c24_162], %368 {strides = array<i32>} : memref<16x32xf32, #tpu.memory_space<vmem>>, vector<8x8xf32>,
    %c0_163 = arith.constant 0 : index
    %c0_164 = arith.constant 0 : index
    %370 = vector.load %arg13[%c0_163, %c0_164] : memref<16x32xf32, #tpu.memory_space<vmem>>, vector<16x32xf32>
    %c1_165 = arith.constant 1 : index
    %c0_166 = arith.constant 0 : index
    %c0_167 = arith.constant 0 : index
    %371 = vector.load %arg3[%c1_165, %c0_166, %c0_167] : memref<2x32x32xf32, #tpu.memory_space<vmem>>, vector<1x32x32xf32>
    %372 = vector.shape_cast %371 : vector<1x32x32xf32> to vector<32x32xf32>
    %cst_168 = arith.constant dense<0.000000e+00> : vector<16x32xf32>
    %373 = tpu.matmul %370, %372, %cst_168 {dimension_numbers = #tpu.dot_dimension_numbers<[1], [0], [0], [1], [0, 0, 1, 1], [], []>} : vector<16x32xf32>, vector<32x32xf32>, vector<16x32xf32> -> vector<16x32xf32>
    %374 = arith.addf %225, %373 : vector<16x32xf32>
    %c1_169 = arith.constant 1 : index
    %c0_170 = arith.constant 0 : index
    %c0_171 = arith.constant 0 : index
    %375 = vector.load %arg4[%c1_169, %c0_170, %c0_171] : memref<2x1x32xf32, #tpu.memory_space<vmem>>, vector<1x1x32xf32>
    %376 = vector.shape_cast %375 : vector<1x1x32xf32> to vector<1x32xf32>
    %c1_172 = arith.constant 1 : index
    %c0_173 = arith.constant 0 : index
    %c0_174 = arith.constant 0 : index
    %377 = vector.load %arg5[%c1_172, %c0_173, %c0_174] : memref<2x1x32xf32, #tpu.memory_space<vmem>>, vector<1x1x32xf32>
    %378 = vector.shape_cast %377 : vector<1x1x32xf32> to vector<1x32xf32>
    %cst_175 = arith.constant dense<0.000000e+00> : vector<16xf32>
    %379 = vector.multi_reduction <add>, %374, %cst_175 [1] : vector<16x32xf32> to vector<16xf32>
    %380 = vector.shape_cast %379 : vector<16xf32> to vector<16x1xf32>
    %cst_176 = arith.constant 3.200000e+01 : f32
    %381 = vector.broadcast %cst_176 : f32 to vector<16x1xf32>
    %382 = arith.divf %380, %381 : vector<16x1xf32>
    %383 = arith.mulf %374, %374 : vector<16x32xf32>
    %cst_177 = arith.constant dense<0.000000e+00> : vector<16xf32>
    %384 = vector.multi_reduction <add>, %383, %cst_177 [1] : vector<16x32xf32> to vector<16xf32>
    %385 = vector.shape_cast %384 : vector<16xf32> to vector<16x1xf32>
    %cst_178 = arith.constant 3.200000e+01 : f32
    %386 = vector.broadcast %cst_178 : f32 to vector<16x1xf32>
    %387 = arith.divf %385, %386 : vector<16x1xf32>
    %388 = arith.mulf %382, %382 : vector<16x1xf32>
    %389 = arith.subf %387, %388 : vector<16x1xf32>
    %390 = vector.broadcast %382 : vector<16x1xf32> to vector<16x32xf32>
    %391 = arith.subf %374, %390 : vector<16x32xf32>
    %cst_179 = arith.constant 9.99999974E-6 : f32
    %392 = vector.broadcast %cst_179 : f32 to vector<16x1xf32>
    %393 = arith.addf %389, %392 : vector<16x1xf32>
    %394 = math.rsqrt %393 : vector<16x1xf32>
    %395 = vector.broadcast %394 : vector<16x1xf32> to vector<16x32xf32>
    %396 = arith.mulf %391, %395 : vector<16x32xf32>
    %397 = vector.broadcast %376 : vector<1x32xf32> to vector<16x32xf32>
    %398 = arith.mulf %396, %397 : vector<16x32xf32>
    %399 = vector.broadcast %378 : vector<1x32xf32> to vector<16x32xf32>
    %400 = arith.addf %398, %399 : vector<16x32xf32>
    %c1_180 = arith.constant 1 : index
    %c0_181 = arith.constant 0 : index
    %c0_182 = arith.constant 0 : index
    %401 = vector.load %arg6[%c1_180, %c0_181, %c0_182] : memref<2x32x64xf32, #tpu.memory_space<vmem>>, vector<1x32x64xf32>
    %402 = vector.shape_cast %401 : vector<1x32x64xf32> to vector<32x64xf32>
    %cst_183 = arith.constant dense<0.000000e+00> : vector<16x64xf32>
    %403 = tpu.matmul %400, %402, %cst_183 {dimension_numbers = #tpu.dot_dimension_numbers<[1], [0], [0], [1], [0, 0, 1, 1], [], []>} : vector<16x32xf32>, vector<32x64xf32>, vector<16x64xf32> -> vector<16x64xf32>
    %c1_184 = arith.constant 1 : index
    %c0_185 = arith.constant 0 : index
    %c0_186 = arith.constant 0 : index
    %404 = vector.load %arg7[%c1_184, %c0_185, %c0_186] : memref<2x1x64xf32, #tpu.memory_space<vmem>>, vector<1x1x64xf32>
    %405 = vector.shape_cast %404 : vector<1x1x64xf32> to vector<1x64xf32>
    %406 = vector.broadcast %405 : vector<1x64xf32> to vector<16x64xf32>
    %407 = arith.addf %403, %406 : vector<16x64xf32>
    %cst_187 = arith.constant 0.000000e+00 : f32
    %408 = vector.broadcast %cst_187 : f32 to vector<16x64xf32>
    %409 = arith.maximumf %407, %408 : vector<16x64xf32>
    %c1_188 = arith.constant 1 : index
    %c0_189 = arith.constant 0 : index
    %c0_190 = arith.constant 0 : index
    %410 = vector.load %arg8[%c1_188, %c0_189, %c0_190] : memref<2x64x32xf32, #tpu.memory_space<vmem>>, vector<1x64x32xf32>
    %411 = vector.shape_cast %410 : vector<1x64x32xf32> to vector<64x32xf32>
    %cst_191 = arith.constant dense<0.000000e+00> : vector<16x32xf32>
    %412 = tpu.matmul %409, %411, %cst_191 {dimension_numbers = #tpu.dot_dimension_numbers<[1], [0], [0], [1], [0, 0, 1, 1], [], []>} : vector<16x64xf32>, vector<64x32xf32>, vector<16x32xf32> -> vector<16x32xf32>
    %c1_192 = arith.constant 1 : index
    %c0_193 = arith.constant 0 : index
    %c0_194 = arith.constant 0 : index
    %413 = vector.load %arg9[%c1_192, %c0_193, %c0_194] : memref<2x1x32xf32, #tpu.memory_space<vmem>>, vector<1x1x32xf32>
    %414 = vector.shape_cast %413 : vector<1x1x32xf32> to vector<1x32xf32>
    %415 = vector.broadcast %414 : vector<1x32xf32> to vector<16x32xf32>
    %416 = arith.addf %412, %415 : vector<16x32xf32>
    %417 = arith.addf %400, %416 : vector<16x32xf32>
    %c1_195 = arith.constant 1 : index
    %c0_196 = arith.constant 0 : index
    %c0_197 = arith.constant 0 : index
    %418 = vector.load %arg10[%c1_195, %c0_196, %c0_197] : memref<2x1x32xf32, #tpu.memory_space<vmem>>, vector<1x1x32xf32>
    %419 = vector.shape_cast %418 : vector<1x1x32xf32> to vector<1x32xf32>
    %c1_198 = arith.constant 1 : index
    %c0_199 = arith.constant 0 : index
    %c0_200 = arith.constant 0 : index
    %420 = vector.load %arg11[%c1_198, %c0_199, %c0_200] : memref<2x1x32xf32, #tpu.memory_space<vmem>>, vector<1x1x32xf32>
    %421 = vector.shape_cast %420 : vector<1x1x32xf32> to vector<1x32xf32>
    %cst_201 = arith.constant dense<0.000000e+00> : vector<16xf32>
    %422 = vector.multi_reduction <add>, %417, %cst_201 [1] : vector<16x32xf32> to vector<16xf32>
    %423 = vector.shape_cast %422 : vector<16xf32> to vector<16x1xf32>
    %cst_202 = arith.constant 3.200000e+01 : f32
    %424 = vector.broadcast %cst_202 : f32 to vector<16x1xf32>
    %425 = arith.divf %423, %424 : vector<16x1xf32>
    %426 = arith.mulf %417, %417 : vector<16x32xf32>
    %cst_203 = arith.constant dense<0.000000e+00> : vector<16xf32>
    %427 = vector.multi_reduction <add>, %426, %cst_203 [1] : vector<16x32xf32> to vector<16xf32>
    %428 = vector.shape_cast %427 : vector<16xf32> to vector<16x1xf32>
    %cst_204 = arith.constant 3.200000e+01 : f32
    %429 = vector.broadcast %cst_204 : f32 to vector<16x1xf32>
    %430 = arith.divf %428, %429 : vector<16x1xf32>
    %431 = arith.mulf %425, %425 : vector<16x1xf32>
    %432 = arith.subf %430, %431 : vector<16x1xf32>
    %433 = vector.broadcast %425 : vector<16x1xf32> to vector<16x32xf32>
    %434 = arith.subf %417, %433 : vector<16x32xf32>
    %cst_205 = arith.constant 9.99999974E-6 : f32
    %435 = vector.broadcast %cst_205 : f32 to vector<16x1xf32>
    %436 = arith.addf %432, %435 : vector<16x1xf32>
    %437 = math.rsqrt %436 : vector<16x1xf32>
    %438 = vector.broadcast %437 : vector<16x1xf32> to vector<16x32xf32>
    %439 = arith.mulf %434, %438 : vector<16x32xf32>
    %440 = vector.broadcast %419 : vector<1x32xf32> to vector<16x32xf32>
    %441 = arith.mulf %439, %440 : vector<16x32xf32>
    %442 = vector.broadcast %421 : vector<1x32xf32> to vector<16x32xf32>
    %443 = arith.addf %441, %442 : vector<16x32xf32>
    %c0_206 = arith.constant 0 : index
    %c0_207 = arith.constant 0 : index
    %444 = vector.load %arg12[%c0_206, %c0_207] : memref<16x32xf32, #tpu.memory_space<vmem>>, vector<16x32xf32>
    tpu.vector_store %arg12[%c0_206, %c0_207], %443 {strides = array<i32>} : memref<16x32xf32, #tpu.memory_space<vmem>>, vector<16x32xf32>,
    return
  }
}

</mosaic_0001>

<bundles_post_ra>
// kernel: transformer_encoder.1
= control target key start
LH: loop header
LB: loop body
LE: loop exit
PB: predicated region body
PF: predicated region fallthrough
CT: control target
= control target key end

     0   :  { %17 = vsyncpa [#allocation5], 0  ;;  %s5147_s0 = inlined_call_operand.vmem [shape: s32[2], index: 0, kind: input, shape index: {}]   ;;  %s5148_s1 = inlined_call_operand.vmem [shape: f32[16,32], index: 1, kind: input, shape index: {}]   ;;  %s5149_s2 = inlined_call_operand.vmem [shape: f32[2,32,96], index: 2, kind: input, shape index: {}]   ;;  %s5150_s3 = inlined_call_operand.vmem [shape: f32[2,32,32], index: 3, kind: input, shape index: {}]   ;;  %s5151_s4 = inlined_call_operand.vmem [shape: f32[2,1,32], index: 4, kind: input, shape index: {}]   ;;  %s5152_s5 = inlined_call_operand.vmem [shape: f32[2,1,32], index: 5, kind: input, shape index: {}]   ;;  %s5153_s6 = inlined_call_operand.vmem [shape: f32[2,32,64], index: 6, kind: input, shape index: {}]   ;;  %s5154_s7 = inlined_call_operand.vmem [shape: f32[2,1,64], index: 7, kind: input, shape index: {}]   ;;  %s5155_s8 = inlined_call_operand.vmem [shape: f32[2,64,32], index: 8, kind: input, shape index: {}]   ;;  %s5156_s9 = inlined_call_operand.vmem [shape: f32[2,1,32], index: 9, kind: input, shape index: {}]   ;;  %s5157_s10 = inlined_call_operand.vmem [shape: f32[2,1,32], index: 10, kind: input, shape index: {}]   ;;  %s5158_s11 = inlined_call_operand.vmem [shape: f32[2,1,32], index: 11, kind: input, shape index: {}]   ;;  %s5159_s12 = inlined_call_operand.hbm [shape: f32[16,32], index: 12, kind: output, shape index: {}]  }
   0x1   :  { %18 = vsyncpa [#allocation4], 0  ;;  %s25_s23 = sshll.u32 %s5147_s0, 4  ;;  %s26_s23 = int_to_ptr.vmem [resolvable:$true] %s25_s23 }
   0x2   :  { %s4415_s24 = scalar_lea.vmem %s26_s23, 16  ;;  %p4420_p1 = scmp.lt.s32.totalorder %s26_s23, %s26_s23 }
   0x3   :  { %p4416_p0 = scmp.ne.s32.totalorder %s26_s23, %s4415_s24  ;;  %p4421_p2 = scmp.lt.s32.totalorder %s4415_s24, %s4415_s24 }
   0x5   :  { %p4422_p3 = por %p4421_p2, %p4420_p1 }
   0x7   :  { %p4423_p4 = pnand %p4422_p3, %p4416_p0 }
   0x9   :  { %4426 = shalt.err (!%p4423_p4)
}
   0xa   :  { %s4453_s25 = smov [#allocation3]  }
   0xb   :  { %28 = dma.vmem_to_smem %s26_s23, 16, %s4453_s25, [#allocation5]  }
   0xc   :  { %4449 = dma.done.wait [#allocation5], 16  }
   0xd   :  { %4450 = vsyncadd [#allocation5], 4294967280 }
   0xe   :  { %54 = sfence }
   0xf   :  { %v65_v0 = vld [vmem:[%s5149_s2] sm:$0xff]  ;;  %v66_v1 = vld [vmem:[%s5149_s2 + $0x8] sm:$0xff]  ;;  %v67_v2 = vld [vmem:[%s5149_s2 + $0x10] sm:$0xff]  ;;  %vm69_vm0 = vcmask 261120   ;;  %v4454_v8 = vmov 0.0   ;;  %vm4455_vm1 = vmmov 0   ;;  %v55_v28 = vlaneseq }
  0x10   :  { %v4236_v3 = vpack.c.bf16 %v66_v1, %v65_v0  ;;  %v68_v4 = vld [vmem:[%s5149_s2 + $0x18] sm:$0xff]  ;;  %v4555_v5 = vld [vmem:[%s5148_s1] sm:$0xff]  ;;  %v4562_v7 = vld [vmem:[%s5148_s1 + $0x8] sm:$0xff]  ;;  %3993 = vmatprep.subr.mxu0 %v4454_v8  ;;  %3995 = vmatprep.mubr.msk.f32.mxu0 %vm4455_vm1, %v4454_v8  ;;  %s4456_s1 = smov 96   ;;  %s4457_s19 = smov 120   ;;  %vm156_vm2 = vcmask 64512  }
  0x11   :  { %v4240_v6 = vpack.c.bf16 %v68_v4, %v67_v2  ;;  %3980 = vmatprep.mubr.msk.f32.mxu1 %vm69_vm0, %v4555_v5  ;;  %s4458_s20 = smov 88   ;;  %s4459_s21 = smov 80   ;;  %v56_v29 = vand.u32 127, %v55_v28  ;;  %vm491_vm5 = vcmask 130112   ;;  %vm663_vm6 = vcmask 195712  }
  0x12   :  { %4237 = vmatprep.subr.bf16.mxu1 %v4236_v3  ;;  %s4460_s22 = smov 112   ;;  %s4461_s23 = smov 72   ;;  %vm835_vm7 = vcmask 261312   ;;  %vm1764_vm8 = vcmask 523264  }
  0x13   :  { %4239 = vmatpush3.bf16.msra.mxu1 %v4236_v3  ;;  %s4462_s24 = smov 104   ;;  %s4463_s25 = smov 64  }
  0x14   :  { %4241 = vmatprep.subr.bf16.mxu1 %v4240_v6  ;;  %s4464_s26 = smov 56   ;;  %s57_s27 = sld [smem:[#allocation3]] }
  0x15   :  { %s3749_s28 = sld [smem:[#allocation3 + $0x1]]  ;;  %s5162_s29 = smov 40  }
  0x16   :  { %s5160_s0 = smov 48   ;;  %s4467_s30 = smov 8  }
  0x17   :  { %4243 = vmatpush3.bf16.msra.mxu1 %v4240_v6  ;;  %s5166_s13 = smov 16   ;;  %s5164_s14 = smov 24  }
  0x18   :  { %3983 = vmatprep.subr.mxu1 %v4454_v8 }
  0x1a   :  { %3981 = vmatmul.mubr.msk.f32.vlgmr.msra.gmra.mrb[0].mxu1 %vm69_vm0, %v4562_v7  ;;  %v58_v30 = vstv %s57_s27 }
  0x1b   :  { %3985 = vmatprep.mubr.msk.f32.mxu1 %vm4455_vm1, %v4454_v8  ;;  %vm4642_vm3 = vcmp.lt.s32.totalorder %v56_v29, %v58_v30  ;;  %v61_v44 = vstv %s3749_s28 }
  0x1c   :  { %vm4658_vm4 = vcmp.lt.s32.totalorder %v56_v29, %v61_v44 }
  0xed   :  { %v4572_v9 = vpop.f32.mrb[0].mxu1 }
  0xee   :  { %v4574_v10 = vpop.f32.mrb[1].mxu1  ;;  %v152_v12 = vmul.f32 0.35355338, %v4572_v9 }
  0xef   :  { %154 = vrot.lane.b32.xlu0 %v4574_v10, %s4456_s1  ;;  %v151_v11 = vmul.f32 0.35355338, %v4574_v10 }
  0xf1   :  { %321 = vrot.lane.b32.xlu1 %v151_v11, %s4457_s19 }
  0xf3   :  { %323 = vrot.lane.b32.xlu0 %v4574_v10, %s4458_s20 }
  0xf5   :  { %495 = vrot.lane.b32.xlu1 %v4574_v10, %s4459_s21 }
  0xf7   :  { %493 = vrot.lane.b32.xlu0 %v151_v11, %s4460_s22 }
  0xf9   :  { %667 = vrot.lane.b32.xlu1 %v4574_v10, %s4461_s23 }
  0xfb   :  { %665 = vrot.lane.b32.xlu0 %v151_v11, %s4462_s24 }
  0xfd   :  { %838 = vrot.lane.b32.xlu1 %v4572_v9, %s4456_s1 }
  0xff   :  { %1006 = vrot.lane.b32.xlu0 %v4572_v9, %s4458_s20 }
 0x101   :  { %1004 = vrot.lane.b32.xlu1 %v152_v12, %s4457_s19 }
 0x103   :  { %1177 = vrot.lane.b32.xlu0 %v4572_v9, %s4459_s21 }
 0x105   :  { %1175 = vrot.lane.b32.xlu1 %v152_v12, %s4460_s22 }
 0x107   :  { %1348 = vrot.lane.b32.xlu0 %v4572_v9, %s4461_s23 }
 0x109   :  { %1346 = vrot.lane.b32.xlu1 %v152_v12, %s4462_s24 }
 0x10b   :  { %244 = vrot.lane.b32.xlu0 %v4574_v10, %s4463_s25 }
 0x10d   :  { %411 = vrot.lane.b32.xlu1 %v4574_v10, %s4464_s26 }
 0x161   :  { %v155_v13 = vpop.permute.xlu0 %154 }
 0x162   :  { %3984 = vmatpush3.xpose.msk.msra.mxu1 %vm156_vm2, %v155_v13 }
 0x163   :  { %v322_v14 = vpop.permute.xlu1 %321  ;;  %3988 = vmatprep.subr.mxu1 %v4454_v8 }
 0x165   :  { %v324_v15 = vpop.permute.xlu0 %323  ;;  %3986 = vmatmul.mubr.msk.f32.vlgmr.msra.gmra.mrb[2].mxu1 %vm156_vm2, %v151_v11 }
 0x166   :  { %3994 = vmatpush3.xpose.msk.msra.mxu0 %vm156_vm2, %v324_v15  ;;  %3990 = vmatprep.mubr.msk.f32.mxu1 %vm4455_vm1, %v4454_v8 }
 0x167   :  { %v496_v16 = vpop.permute.xlu1 %495  ;;  %4003 = vmatprep.subr.mxu0 %v4454_v8 }
 0x169   :  { %v494_v17 = vpop.permute.xlu0 %493  ;;  %3996 = vmatmul.mubr.msk.f32.vlgmr.msra.gmra.mrb[0].mxu0 %vm156_vm2, %v322_v14 }
 0x16a   :  { %4004 = vmatpush3.xpose.msk.msra.mxu0 %vm156_vm2, %v496_v16  ;;  %4005 = vmatprep.mubr.msk.f32.mxu0 %vm4455_vm1, %v4454_v8 }
 0x16b   :  { %v668_v18 = vpop.permute.xlu1 %667  ;;  %4013 = vmatprep.subr.mxu0 %v4454_v8 }
 0x16d   :  { %v666_v19 = vpop.permute.xlu0 %665  ;;  %4006 = vmatmul.mubr.msk.f32.vlgmr.msra.gmra.mrb[2].mxu0 %vm156_vm2, %v494_v17 }
 0x16e   :  { %4014 = vmatpush3.xpose.msk.msra.mxu0 %vm156_vm2, %v668_v18  ;;  %4015 = vmatprep.mubr.msk.f32.mxu0 %vm4455_vm1, %v4454_v8 }
 0x16f   :  { %v839_v20 = vpop.permute.xlu1 %838  ;;  %4023 = vmatprep.subr.mxu0 %v4454_v8 }
 0x171   :  { %v1007_v21 = vpop.permute.xlu0 %1006  ;;  %4016 = vmatmul.mubr.msk.f32.vlgmr.msra.gmra.mrb[4].mxu0 %vm156_vm2, %v666_v19 }
 0x172   :  { %4024 = vmatpush3.xpose.msk.msra.mxu0 %vm156_vm2, %v839_v20  ;;  %4025 = vmatprep.mubr.msk.f32.mxu0 %vm4455_vm1, %v4454_v8 }
 0x173   :  { %4033 = vmatprep.subr.mxu0 %v4454_v8  ;;  %v1005_v22 = vpop.permute.xlu1 %1004 }
 0x175   :  { %v1178_v23 = vpop.permute.xlu0 %1177  ;;  %4026 = vmatmul.mubr.msk.f32.vlgmr.msra.gmra.mrb[6].mxu0 %vm156_vm2, %v152_v12 }
 0x176   :  { %4034 = vmatpush3.xpose.msk.msra.mxu0 %vm156_vm2, %v1007_v21  ;;  %4035 = vmatprep.mubr.msk.f32.mxu0 %vm4455_vm1, %v4454_v8 }
 0x177   :  { %4043 = vmatprep.subr.mxu0 %v4454_v8  ;;  %v1176_v25 = vpop.permute.xlu1 %1175 }
 0x179   :  { %v1349_v24 = vpop.permute.xlu0 %1348  ;;  %4036 = vmatmul.mubr.msk.f32.vlgmr.msra.gmra.mrb[8].mxu0 %vm156_vm2, %v1005_v22 }
 0x17a   :  { %4044 = vmatpush3.xpose.msk.msra.mxu0 %vm156_vm2, %v1178_v23  ;;  %4045 = vmatprep.mubr.msk.f32.mxu0 %vm4455_vm1, %v4454_v8 }
 0x17b   :  { %4053 = vmatprep.subr.mxu0 %v4454_v8  ;;  %v1347_v27 = vpop.permute.xlu1 %1346 }
 0x17d   :  { %v245_v26 = vpop.permute.xlu0 %244  ;;  %4046 = vmatmul.mubr.msk.f32.vlgmr.msra.gmra.mrb[10].mxu0 %vm156_vm2, %v1176_v25 }
 0x17e   :  { %3989 = vmatpush3.msra.mxu1 %v245_v26  ;;  %4054 = vmatpush3.xpose.msk.msra.mxu0 %vm156_vm2, %v1349_v24 }
 0x17f   :  { %4055 = vmatprep.mubr.msk.f32.mxu0 %vm4455_vm1, %v4454_v8  ;;  %3998 = vmatprep.subr.mxu1 %v4454_v8  ;;  %v4678_v2 = vpop.permute.xlu1 %411 }
 0x181   :  { %4056 = vmatmul.mubr.msk.f32.vlgmr.msra.gmra.mrb[12].mxu0 %vm156_vm2, %v1347_v27 }
 0x238   :  { %v228_v32 = vpop.f32.mrb[2].mxu1 }
 0x239   :  { %v232_v33 = vsel %vm4642_vm3, %v228_v32, -1000000.0  ;;  %v3987_v34 = vpop.f32.mrb[3].mxu1 }
 0x23a   :  { %v233_v35 = vsel %vm156_vm2, %v232_v33, -inf }
 0x23b   :  { %234 = vmax.xlane.f32.xlu0 %v233_v35 }
 0x23c   :  { %v395_v36 = vpop.f32.mrb[0].mxu0 }
 0x23d   :  { %v399_v37 = vsel %vm4642_vm3, %v395_v36, -1000000.0  ;;  %v3997_v38 = vpop.f32.mrb[1].mxu0 }
 0x23e   :  { %v400_v39 = vsel %vm156_vm2, %v399_v37, -inf }
 0x23f   :  { %401 = vmax.xlane.f32.xlu1 %v400_v39 }
 0x240   :  { %v567_v40 = vpop.f32.mrb[2].mxu0 }
 0x241   :  { %v571_v41 = vsel %vm4642_vm3, %v567_v40, -1000000.0  ;;  %v4007_v42 = vpop.f32.mrb[3].mxu0 }
 0x242   :  { %v572_v43 = vsel %vm156_vm2, %v571_v41, -inf }
 0x243   :  { %573 = vmax.xlane.f32.xlu0 %v572_v43 }
 0x244   :  { %v739_v45 = vpop.f32.mrb[4].mxu0 }
 0x245   :  { %v743_v46 = vsel %vm4642_vm3, %v739_v45, -1000000.0  ;;  %v4017_v47 = vpop.f32.mrb[5].mxu0 }
 0x246   :  { %v744_v48 = vsel %vm156_vm2, %v743_v46, -inf }
 0x247   :  { %745 = vmax.xlane.f32.xlu0 %v744_v48 }
 0x248   :  { %v911_v50 = vpop.f32.mrb[6].mxu0 }
 0x249   :  { %v915_v51 = vsel %vm4658_vm4, %v911_v50, -1000000.0  ;;  %v4027_v52 = vpop.f32.mrb[7].mxu0 }
 0x24a   :  { %v916_v53 = vsel %vm156_vm2, %v915_v51, -inf }
 0x24b   :  { %917 = vmax.xlane.f32.xlu1 %v916_v53 }
 0x24c   :  { %v1078_v54 = vpop.f32.mrb[8].mxu0 }
 0x24d   :  { %v1082_v55 = vsel %vm4658_vm4, %v1078_v54, -1000000.0  ;;  %v4037_v56 = vpop.f32.mrb[9].mxu0 }
 0x24e   :  { %v1083_v57 = vsel %vm156_vm2, %v1082_v55, -inf }
 0x24f   :  { %1084 = vmax.xlane.f32.xlu0 %v1083_v57 }
 0x250   :  { %v1249_v58 = vpop.f32.mrb[10].mxu0 }
 0x251   :  { %v1253_v59 = vsel %vm4658_vm4, %v1249_v58, -1000000.0  ;;  %v4047_v60 = vpop.f32.mrb[11].mxu0 }
 0x252   :  { %v1254_v61 = vsel %vm156_vm2, %v1253_v59, -inf }
 0x253   :  { %1255 = vmax.xlane.f32.xlu1 %v1254_v61 }
 0x254   :  { %v1420_v62 = vpop.f32.mrb[12].mxu0 }
 0x255   :  { %v1424_v63 = vsel %vm4658_vm4, %v1420_v62, -1000000.0  ;;  %v4057_v0 = vpop.f32.mrb[13].mxu0 }
 0x256   :  { %v1425_v1 = vsel %vm156_vm2, %v1424_v63, -inf }
 0x257   :  { %1426 = vmax.xlane.f32.xlu0 %v1425_v1 }
 0x264   :  { %755 = vrot.lane.b32.xlu1 %v4574_v10, %s5162_s29 }
 0x26d   :  { %583 = vrot.lane.b32.xlu0 %v4574_v10, %s5160_s0 }
 0x2c8   :  { %v235_v3 = vpop.xlane.xlu0 %234 }
 0x2c9   :  { %v236_v4 = vsub.f32 %v232_v33, %v235_v3 }
 0x2cb   :  { %v237_v6 = vmul.f32 1.442695, %v236_v4 }
 0x2cc   :  { %v402_v11 = vpop.xlane.xlu1 %401 }
 0x2cd   :  { %4335 = vpow2.f32 %v237_v6  ;;  %v403_v12 = vsub.f32 %v399_v37, %v402_v11 }
 0x2cf   :  { %v404_v13 = vmul.f32 1.442695, %v403_v12 }
 0x2d0   :  { %v574_v14 = vpop.xlane.xlu0 %573 }
 0x2d1   :  { %4337 = vpow2.f32 %v404_v13  ;;  %v575_v15 = vsub.f32 %v571_v41, %v574_v14 }
 0x2d3   :  { %v576_v16 = vmul.f32 1.442695, %v575_v15 }
 0x2d4   :  { %v746_v17 = vpop.xlane.xlu0 %745 }
 0x2d5   :  { %4339 = vpow2.f32 %v576_v16  ;;  %v747_v18 = vsub.f32 %v743_v46, %v746_v17 }
 0x2d7   :  { %v4336_v19 = vpop.eup %4335  ;;  %v748_v20 = vmul.f32 1.442695, %v747_v18 }
 0x2d8   :  { %v239_v10 = vsel %vm156_vm2, %v4336_v19, 0.0  ;;  %v918_v27 = vpop.xlane.xlu1 %917 }
 0x2d9   :  { %4341 = vpow2.f32 %v748_v20  ;;  %240 = vadd.xlane.f32.xlu1 %v239_v10  ;;  %v919_v28 = vsub.f32 %v915_v51, %v918_v27  ;;  %v1520_v27 = vld [vmem:[%s5150_s3 + $0x8] sm:$0xff] }
 0x2db   :  { %v4338_v21 = vpop.eup %4337  ;;  %v920_v33 = vmul.f32 1.442695, %v919_v28 }
 0x2dc   :  { %v406_v22 = vsel %vm156_vm2, %v4338_v21, 0.0  ;;  %v1085_v29 = vpop.xlane.xlu0 %1084 }
 0x2dd   :  { %407 = vadd.xlane.f32.xlu0 %v406_v22  ;;  %v1086_v32 = vsub.f32 %v1082_v55, %v1085_v29  ;;  %4343 = vpow2.f32 %v920_v33  ;;  %v1522_v33 = vld [vmem:[%s5150_s3 + $0x18] sm:$0xff] }
 0x2df   :  { %v4340_v23 = vpop.eup %4339  ;;  %v1087_v36 = vmul.f32 1.442695, %v1086_v32  ;;  %v1521_v32 = vld [vmem:[%s5150_s3 + $0x10] sm:$0xff] }
 0x2e0   :  { %v578_v24 = vsel %vm156_vm2, %v4340_v23, 0.0  ;;  %v1256_v30 = vpop.xlane.xlu1 %1255 }
 0x2e1   :  { %579 = vadd.xlane.f32.xlu1 %v578_v24  ;;  %v1257_v34 = vsub.f32 %v1253_v59, %v1256_v30  ;;  %4345 = vpow2.f32 %v1087_v36 }
 0x2e3   :  { %v4683_v25 = vpop.eup %4341  ;;  %v1258_v37 = vmul.f32 1.442695, %v1257_v34  ;;  %v4248_v34 = vpack.c.bf16 %v1522_v33, %v1521_v32 }
 0x2e4   :  { %v750_v26 = vsel %vm156_vm2, %v4683_v25, 0.0  ;;  %v1427_v35 = vpop.xlane.xlu0 %1426  ;;  %v756_v48 = vpop.permute.xlu1 %755 }
 0x2e5   :  { %751 = vadd.xlane.f32.xlu0 %v750_v26  ;;  %v1428_v38 = vsub.f32 %v1424_v63, %v1427_v35  ;;  %4347 = vpow2.f32 %v1258_v37  ;;  %v1519_v26 = vld [vmem:[%s5150_s3] sm:$0xff] }
 0x2e6   :  { %v4244_v29 = vpack.c.bf16 %v1520_v27, %v1519_v26 }
 0x2e7   :  { %v1429_v39 = vmul.f32 1.442695, %v1428_v38  ;;  %v4344_v40 = vpop.eup %4343 }
 0x2e8   :  { %v922_v42 = vsel %vm156_vm2, %v4344_v40, 0.0  ;;  %v584_v50 = vpop.permute.xlu0 %583  ;;  %4245 = vmatprep.subr.bf16.mxu0 %v4244_v29 }
 0x2e9   :  { %4349 = vpow2.f32 %v1429_v39  ;;  %4247 = vmatpush3.bf16.msra.mxu0 %v4244_v29 }
 0x2ea   :  { %4249 = vmatprep.subr.bf16.mxu0 %v4248_v34 }
 0x2eb   :  { %v4691_v41 = vpop.eup %4345 }
 0x2ec   :  { %v1089_v45 = vsel %vm156_vm2, %v4691_v41, 0.0 }
 0x2ed   :  { %4251 = vmatpush3.bf16.msra.mxu0 %v4248_v34 }
 0x2ef   :  { %v4694_v43 = vpop.eup %4347 }
 0x2f0   :  { %v1260_v44 = vsel %vm156_vm2, %v4694_v43, 0.0 }
 0x2f2   :  { %1094 = vrot.lane.b32.xlu1 %v4572_v9, %s4464_s26 }
 0x2f3   :  { %v4700_v46 = vpop.eup %4349 }
 0x2f4   :  { %v1431_v47 = vsel %vm156_vm2, %v4700_v46, 0.0 }
 0x2fb   :  { %927 = vrot.lane.b32.xlu0 %v4572_v9, %s4463_s25 }
 0x316   :  { %923 = vadd.xlane.f32.xlu1 %v922_v42 }
 0x31a   :  { %1261 = vadd.xlane.f32.xlu1 %v1260_v44  ;;  %1090 = vadd.xlane.f32.xlu0 %v1089_v45 }
 0x31e   :  { %1432 = vadd.xlane.f32.xlu1 %v1431_v47 }
 0x32f   :  { %1436 = vrot.lane.b32.xlu1 %v4572_v9, %s5162_s29 }
 0x330   :  { %1265 = vrot.lane.b32.xlu0 %v4572_v9, %s5160_s0 }
 0x366   :  { %v241_v51 = vpop.xlane.xlu1 %240 }
 0x367   :  { %4351 = vrcp.f32 %v241_v51 }
 0x36a   :  { %v408_v52 = vpop.xlane.xlu0 %407 }
 0x36b   :  { %4353 = vrcp.f32 %v408_v52 }
 0x36e   :  { %v580_v53 = vpop.xlane.xlu1 %579 }
 0x36f   :  { %4355 = vrcp.f32 %v580_v53 }
 0x371   :  { %v4352_v54 = vpop.eup %4351 }
 0x372   :  { %v243_v55 = vmul.f32 %v4352_v54, %v4336_v19  ;;  %v752_v56 = vpop.xlane.xlu0 %751  ;;  %v1095_v63 = vpop.permute.xlu1 %1094 }
 0x373   :  { %4357 = vrcp.f32 %v752_v56 }
 0x374   :  { %3991 = vmatmul.mubr.msk.f32.vlgmr.msra.gmra.mrb[4].mxu1 %vm156_vm2, %v243_v55 }
 0x375   :  { %v4354_v57 = vpop.eup %4353  ;;  %3999 = vmatpush3.msra.mxu1 %v4678_v2  ;;  %4000 = vmatprep.mubr.msk.f32.mxu1 %vm4455_vm1, %v4454_v8 }
 0x376   :  { %v410_v9 = vmul.f32 %v4354_v57, %v4338_v21  ;;  %4008 = vmatprep.subr.mxu1 %v4454_v8  ;;  %v928_v62 = vpop.permute.xlu0 %927 }
 0x378   :  { %4001 = vmatmul.mubr.msk.f32.vlgmr.msra.gmra.mrb[6].mxu1 %vm156_vm2, %v410_v9 }
 0x379   :  { %v4356_v58 = vpop.eup %4355  ;;  %4009 = vmatpush3.msra.mxu1 %v584_v50  ;;  %4010 = vmatprep.mubr.msk.f32.mxu1 %vm4455_vm1, %v4454_v8 }
 0x37a   :  { %v582_v59 = vmul.f32 %v4356_v58, %v4340_v23  ;;  %4018 = vmatprep.subr.mxu1 %v4454_v8  ;;  %v1656_v58 = vld [vmem:[%s5153_s6 + $0x8] sm:$0xff] }
 0x37c   :  { %4011 = vmatmul.mubr.msk.f32.vlgmr.msra.gmra.mrb[8].mxu1 %vm156_vm2, %v582_v59  ;;  %v1657_v59 = vld [vmem:[%s5153_s6 + $0x10] sm:$0xff] }
 0x37d   :  { %v4358_v60 = vpop.eup %4357  ;;  %4019 = vmatpush3.msra.mxu1 %v756_v48  ;;  %4020 = vmatprep.mubr.msk.f32.mxu1 %vm4455_vm1, %v4454_v8 }
 0x37e   :  { %v754_v61 = vmul.f32 %v4358_v60, %v4683_v25  ;;  %4028 = vmatprep.subr.mxu1 %v4454_v8 }
 0x380   :  { %4021 = vmatmul.mubr.msk.f32.vlgmr.msra.gmra.mrb[10].mxu1 %vm156_vm2, %v754_v61  ;;  %v1658_v61 = vld [vmem:[%s5153_s6 + $0x18] sm:$0xff] }
 0x381   :  { %4029 = vmatpush3.msra.mxu1 %v928_v62  ;;  %4030 = vmatprep.mubr.msk.f32.mxu1 %vm4455_vm1, %v4454_v8  ;;  %v4256_v62 = vpack.c.bf16 %v1658_v61, %v1657_v59  ;;  %v3789_v61 = vld [vmem:[%s5149_s2 + $0x28] sm:$0xff] }
 0x382   :  { %4038 = vmatprep.subr.mxu1 %v4454_v8 }
 0x3a3   :  { %v924_v0 = vpop.xlane.xlu1 %923 }
 0x3a4   :  { %4359 = vrcp.f32 %v924_v0  ;;  %v1750_v0 = vld [vmem:[%s5155_s8 + $0x8] sm:$0xff] }
 0x3a7   :  { %v1262_v1 = vpop.xlane.xlu1 %1261  ;;  %v1091_v2 = vpop.xlane.xlu0 %1090 }
 0x3a8   :  { %4361 = vrcp.f32 %v1091_v2 }
 0x3a9   :  { %4363 = vrcp.f32 %v1262_v1  ;;  %v1751_v1 = vld [vmem:[%s5155_s8 + $0x10] sm:$0xff] }
 0x3ab   :  { %v1433_v3 = vpop.xlane.xlu1 %1432  ;;  %v1266_v14 = vpop.permute.xlu0 %1265 }
 0x3ac   :  { %4365 = vrcp.f32 %v1433_v3  ;;  %v1752_v3 = vld [vmem:[%s5155_s8 + $0x18] sm:$0xff] }
 0x3ae   :  { %v4360_v4 = vpop.eup %4359 }
 0x3af   :  { %v926_v6 = vmul.f32 %v4360_v4, %v4344_v40  ;;  %v1437_v17 = vpop.permute.xlu1 %1436  ;;  %v4264_v4 = vpack.c.bf16 %v1752_v3, %v1751_v1 }
 0x3b1   :  { %4031 = vmatmul.mubr.msk.f32.vlgmr.msra.gmra.mrb[12].mxu1 %vm156_vm2, %v926_v6  ;;  %v1753_v6 = vld [vmem:[%s5155_s8 + $0x20] sm:$0xff] }
 0x3b2   :  { %4039 = vmatpush3.msra.mxu1 %v1095_v63  ;;  %4040 = vmatprep.mubr.msk.f32.mxu1 %vm4455_vm1, %v4454_v8  ;;  %v4362_v11 = vpop.eup %4361  ;;  %v1749_v63 = vld [vmem:[%s5155_s8] sm:$0xff] }
 0x3b3   :  { %4048 = vmatprep.subr.mxu1 %v4454_v8  ;;  %v1093_v12 = vmul.f32 %v4362_v11, %v4691_v41  ;;  %v4364_v13 = vpop.eup %4363  ;;  %v4260_v2 = vpack.c.bf16 %v1750_v0, %v1749_v63  ;;  %v1754_v11 = vld [vmem:[%s5155_s8 + $0x28] sm:$0xff]  ;;  %v3791_v0 = vld [vmem:[%s5149_s2 + $0x38] sm:$0xff] }
 0x3b4   :  { %v1264_v15 = vmul.f32 %v4364_v13, %v4694_v43 }
 0x3b5   :  { %4041 = vmatmul.mubr.msk.f32.vlgmr.msra.gmra.mrb[14].mxu1 %vm156_vm2, %v1093_v12  ;;  %4261 = vmatprep.subr.bf16.mxu0 %v4260_v2  ;;  %v4268_v12 = vpack.c.bf16 %v1754_v11, %v1753_v6 }
 0x3b6   :  { %4049 = vmatpush3.msra.mxu1 %v1266_v14  ;;  %4050 = vmatprep.mubr.msk.f32.mxu1 %vm4455_vm1, %v4454_v8  ;;  %v4366_v16 = vpop.eup %4365 }
 0x3b7   :  { %4058 = vmatprep.subr.mxu1 %v4454_v8  ;;  %v1435_v18 = vmul.f32 %v4366_v16, %v4700_v46 }
 0x3b9   :  { %4051 = vmatmul.mubr.msk.f32.vlgmr.msra.gmra.mrb[16].mxu1 %vm156_vm2, %v1264_v15 }
 0x3ba   :  { %4059 = vmatpush3.msra.mxu1 %v1437_v17  ;;  %4060 = vmatprep.mubr.msk.f32.mxu1 %vm4455_vm1, %v4454_v8 }
 0x3bd   :  { %4061 = vmatmul.mubr.msk.f32.vlgmr.msra.gmra.mrb[18].mxu1 %vm156_vm2, %v1435_v18 }
 0x447   :  { %v316_v19 = vpop.f32.mrb[4].mxu1 }
 0x448   :  { %320 = vst.msk [vmem:[#allocation2] sm:$0xff] %vm156_vm2, %v316_v19  ;;  %v3992_v20 = vpop.f32.mrb[5].mxu1 }
 0x44b   :  { %v483_v10 = vpop.f32.mrb[6].mxu1 }
 0x44c   :  { %488 = vrot.lane.b32.xlu0 %v483_v10, %s4467_s30  ;;  %v4002_v21 = vpop.f32.mrb[7].mxu1 }
 0x44f   :  { %v655_v22 = vpop.f32.mrb[8].mxu1 }
 0x450   :  { %660 = vrot.lane.b32.xlu1 %v655_v22, %s5166_s13  ;;  %v4012_v23 = vpop.f32.mrb[9].mxu1 }
 0x453   :  { %v827_v24 = vpop.f32.mrb[10].mxu1 }
 0x454   :  { %832 = vrot.lane.b32.xlu1 %v827_v24, %s5164_s14  ;;  %v4022_v25 = vpop.f32.mrb[11].mxu1 }
 0x484   :  { %v999_v28 = vpop.f32.mrb[12].mxu1 }
 0x485   :  { %1003 = vst.msk [vmem:[#allocation2 + $0x8] sm:$0xff] %vm156_vm2, %v999_v28  ;;  %v4032_v30 = vpop.f32.mrb[13].mxu1  ;;  %v3778_v28 = vld [vmem:[%s5151_s4] ss:$0 sm:$0xff] }
 0x486   :  { %v3779_v30 = vld [vmem:[%s5152_s5] ss:$0 sm:$0xff] }
 0x488   :  { %v1166_v35 = vpop.f32.mrb[14].mxu1 }
 0x489   :  { %1171 = vrot.lane.b32.xlu0 %v1166_v35, %s4467_s30  ;;  %v4042_v36 = vpop.f32.mrb[15].mxu1 }
 0x48c   :  { %v1337_v37 = vpop.f32.mrb[16].mxu1 }
 0x48d   :  { %1342 = vrot.lane.b32.xlu0 %v1337_v37, %s5166_s13  ;;  %v4052_v38 = vpop.f32.mrb[17].mxu1 }
 0x490   :  { %v1508_v39 = vpop.f32.mrb[18].mxu1 }
 0x491   :  { %1513 = vrot.lane.b32.xlu1 %v1508_v39, %s5164_s14  ;;  %v4062_v40 = vpop.f32.mrb[19].mxu1  ;;  %v1755_v39 = vld [vmem:[%s5155_s8 + $0x30] sm:$0xff] }
 0x492   :  { %v1756_v40 = vld [vmem:[%s5155_s8 + $0x38] sm:$0xff] }
 0x4be   :  { %v489_v41 = vpop.permute.xlu0 %488 }
 0x4bf   :  { %492 = vst.msk [vmem:[#allocation2] sm:$0xff] %vm491_vm5, %v489_v41  ;;  %v4272_v41 = vpack.c.bf16 %v1756_v40, %v1755_v39 }
 0x4c2   :  { %v661_v42 = vpop.permute.xlu1 %660 }
 0x4c3   :  { %664 = vst.msk [vmem:[#allocation2] sm:$0xff] %vm663_vm6, %v661_v42  ;;  %v3780_v42 = vld [vmem:[%s5154_s7] ss:$0 sm:$0xff] }
 0x4c6   :  { %v833_v43 = vpop.permute.xlu1 %832 }
 0x4c7   :  { %836 = vst.msk [vmem:[#allocation2] sm:$0xff] %vm835_vm7, %v833_v43 }
 0x4ce   :  { %v1517_v44 = vld [vmem:[#allocation2] sm:$0xff] }
 0x4cf   :  { %4071 = vmatprep.mubr.msk.f32.mxu0 %vm69_vm0, %v1517_v44 }
 0x4fb   :  { %v1172_v45 = vpop.permute.xlu0 %1171 }
 0x4fc   :  { %1174 = vst.msk [vmem:[#allocation2 + $0x8] sm:$0xff] %vm491_vm5, %v1172_v45 }
 0x4ff   :  { %v1343_v46 = vpop.permute.xlu0 %1342 }
 0x500   :  { %1345 = vst.msk [vmem:[#allocation2 + $0x8] sm:$0xff] %vm663_vm6, %v1343_v46 }
 0x503   :  { %v1514_v47 = vpop.permute.xlu1 %1513 }
 0x504   :  { %1516 = vst.msk [vmem:[#allocation2 + $0x8] sm:$0xff] %vm835_vm7, %v1514_v47 }
 0x50b   :  { %v1518_v48 = vld [vmem:[#allocation2 + $0x8] sm:$0xff] }
 0x50c   :  { %4072 = vmatmul.mubr.msk.f32.vlgmr.msra.gmra.mrb[14].mxu0 %vm69_vm0, %v1518_v48 }
 0x50d   :  { %4263 = vmatpush3.bf16.msra.mxu0 %v4260_v2 }
 0x50e   :  { %4265 = vmatprep.subr.bf16.mxu0 %v4264_v4 }
 0x511   :  { %4267 = vmatpush3.bf16.msra.mxu0 %v4264_v4 }
 0x512   :  { %4269 = vmatprep.subr.bf16.mxu0 %v4268_v12 }
 0x515   :  { %4271 = vmatpush3.bf16.msra.mxu0 %v4268_v12 }
 0x516   :  { %4273 = vmatprep.subr.bf16.mxu0 %v4272_v41 }
 0x519   :  { %4275 = vmatpush3.bf16.msra.mxu0 %v4272_v41 }
 0x51a   :  { %4125 = vmatprep.subr.mxu0 %v4454_v8 }
 0x5df   :  { %v4073_v50 = vpop.f32.mrb[14].mxu0 }
 0x5e0   :  { %v4770_v51 = vadd.f32 %v4073_v50, %v4562_v7  ;;  %v1595_v52 = vpop.f32.mrb[15].mxu0  ;;  %v3783_v50 = vld [vmem:[%s5156_s9] ss:$0 sm:$0xff] }
 0x5e1   :  { %v1604_v53 = vadd.f32 %v1595_v52, %v4555_v5  ;;  %v1655_v5 = vld [vmem:[%s5153_s6] sm:$0xff] }
 0x5e2   :  { %v1611_v54 = vsel %vm69_vm0, %v4770_v51, 0.0  ;;  %v1618_v9 = vmul.f32 %v4770_v51, %v4770_v51  ;;  %v4252_v60 = vpack.c.bf16 %v1656_v58, %v1655_v5 }
 0x5e3   :  { %1612 = vadd.xlane.f32.xlu1 %v1611_v54  ;;  %v1608_v55 = vsel %vm69_vm0, %v1604_v53, 0.0  ;;  %v1617_v56 = vmul.f32 %v1604_v53, %v1604_v53 }
 0x5e4   :  { %1609 = vadd.xlane.f32.xlu0 %v1608_v55  ;;  %v1622_v7 = vsel %vm69_vm0, %v1618_v9, 0.0  ;;  %4253 = vmatprep.subr.bf16.mxu1 %v4252_v60 }
 0x5e5   :  { %v1619_v57 = vsel %vm69_vm0, %v1617_v56, 0.0  ;;  %4255 = vmatpush3.bf16.msra.mxu1 %v4252_v60  ;;  %v3788_v60 = vld [vmem:[%s5149_s2 + $0x20] sm:$0xff] }
 0x5e6   :  { %4257 = vmatprep.subr.bf16.mxu1 %v4256_v62  ;;  %v4276_v63 = vpack.c.bf16 %v3789_v61, %v3788_v60 }
 0x5e8   :  { %1620 = vadd.xlane.f32.xlu0 %v1619_v57 }
 0x5e9   :  { %4259 = vmatpush3.bf16.msra.mxu1 %v4256_v62  ;;  %v3790_v62 = vld [vmem:[%s5149_s2 + $0x30] sm:$0xff] }
 0x5ea   :  { %v4280_v1 = vpack.c.bf16 %v3791_v0, %v3790_v62  ;;  %4277 = vmatprep.subr.bf16.mxu1 %v4276_v63 }
 0x5ec   :  { %1623 = vadd.xlane.f32.xlu0 %v1622_v7 }
 0x670   :  { %v1613_v15 = vpop.xlane.xlu1 %1612 }
 0x671   :  { %v1610_v13 = vpop.xlane.xlu0 %1609  ;;  %v1616_v17 = vmul.f32 0.03125, %v1613_v15 }
 0x672   :  { %v1615_v14 = vmul.f32 0.03125, %v1610_v13 }
 0x673   :  { %v1628_v21 = vmul.f32 %v1616_v17, %v1616_v17  ;;  %v1632_v32 = vsub.f32 %v4770_v51, %v1616_v17 }
 0x674   :  { %v1627_v18 = vmul.f32 %v1615_v14, %v1615_v14  ;;  %v1631_v26 = vsub.f32 %v1604_v53, %v1615_v14 }
 0x675   :  { %v1621_v16 = vpop.xlane.xlu0 %1620 }
 0x676   :  { %v1625_v19 = vmul.f32 0.03125, %v1621_v16 }
 0x678   :  { %v1629_v20 = vsub.f32 %v1625_v19, %v1627_v18 }
 0x679   :  { %v1624_v10 = vpop.xlane.xlu0 %1623 }
 0x67a   :  { %v1633_v22 = vadd.f32 1e-05, %v1629_v20  ;;  %v1626_v23 = vmul.f32 0.03125, %v1624_v10 }
 0x67c   :  { %4367 = vrsqrt.f32 %v1633_v22  ;;  %v1630_v24 = vsub.f32 %v1626_v23, %v1628_v21  ;;  %v3786_v23 = vld [vmem:[%s5157_s10] ss:$0 sm:$0xff] }
 0x67e   :  { %v1634_v25 = vadd.f32 1e-05, %v1630_v24 }
 0x680   :  { %4369 = vrsqrt.f32 %v1634_v25 }
 0x686   :  { %v4368_v27 = vpop.eup %4367 }
 0x687   :  { %v1637_v29 = vmul.f32 %v4368_v27, %v1631_v26  ;;  %v3787_v27 = vld [vmem:[%s5158_s11] ss:$0 sm:$0xff] }
 0x689   :  { %v1645_v33 = vmul.f32 %v3778_v28, %v1637_v29 }
 0x68a   :  { %v4370_v34 = vpop.eup %4369 }
 0x68b   :  { %v1638_v35 = vmul.f32 %v4370_v34, %v1632_v32  ;;  %v1653_v36 = vadd.f32 %v3779_v30, %v1645_v33 }
 0x68d   :  { %v1646_v37 = vmul.f32 %v3778_v28, %v1638_v35  ;;  %4082 = vmatprep.mubr.msk.f32.mxu1 %vm69_vm0, %v1653_v36 }
 0x68f   :  { %v1654_v38 = vadd.f32 %v3779_v30, %v1646_v37 }
 0x691   :  { %4083 = vmatmul.mubr.msk.f32.vlgmr.msra.gmra.mrb[20].mxu1 %vm69_vm0, %v1654_v38 }
 0x692   :  { %4279 = vmatpush3.bf16.msra.mxu1 %v4276_v63 }
 0x693   :  { %4281 = vmatprep.subr.bf16.mxu1 %v4280_v1 }
 0x696   :  { %4283 = vmatpush3.bf16.msra.mxu1 %v4280_v1 }
 0x697   :  { %4115 = vmatprep.subr.mxu1 %v4454_v8 }
 0x764   :  { %v4084_v43 = vpop.f32.mrb[20].mxu1 }
 0x765   :  { %v1744_v44 = vadd.f32 %v4084_v43, %v3780_v42  ;;  %v1738_v45 = vpop.f32.mrb[21].mxu1 }
 0x766   :  { %v1739_v46 = vadd.f32 %v3780_v42, %v1738_v45 }
 0x767   :  { %v1748_v48 = vmax.f32 %v1744_v44, 0.0 }
 0x768   :  { %v1747_v47 = vmax.f32 %v1739_v46, 0.0 }
 0x76a   :  { %4101 = vmatprep.mubr.msk.f32.mxu0 %vm1764_vm8, %v1747_v47 }
 0x76b   :  { %4102 = vmatmul.mubr.msk.f32.vlgmr.msra.gmra.mrb[16].mxu0 %vm1764_vm8, %v1748_v48 }
 0x76c   :  { %4127 = vmatprep.mubr.msk.f32.mxu0 %vm4455_vm1, %v4454_v8 }
 0x83e   :  { %v4103_v51 = vpop.f32.mrb[16].mxu0 }
 0x83f   :  { %v1843_v52 = vadd.f32 %v4103_v51, %v3783_v50  ;;  %v1837_v53 = vpop.f32.mrb[17].mxu0 }
 0x840   :  { %v1838_v54 = vadd.f32 %v3783_v50, %v1837_v53 }
 0x841   :  { %v1847_v55 = vadd.f32 %v1843_v52, %v1654_v38 }
 0x842   :  { %v1846_v56 = vadd.f32 %v1838_v54, %v1653_v36 }
 0x843   :  { %v1853_v57 = vsel %vm69_vm0, %v1847_v55, 0.0  ;;  %v1859_v9 = vmul.f32 %v1847_v55, %v1847_v55 }
 0x844   :  { %1854 = vadd.xlane.f32.xlu0 %v1853_v57  ;;  %v1850_v7 = vsel %vm69_vm0, %v1846_v56, 0.0  ;;  %v1858_v5 = vmul.f32 %v1846_v56, %v1846_v56 }
 0x845   :  { %1851 = vadd.xlane.f32.xlu1 %v1850_v7  ;;  %v1863_v58 = vsel %vm69_vm0, %v1859_v9, 0.0 }
 0x846   :  { %v1860_v59 = vsel %vm69_vm0, %v1858_v5, 0.0 }
 0x848   :  { %1864 = vadd.xlane.f32.xlu0 %v1863_v58 }
 0x849   :  { %1861 = vadd.xlane.f32.xlu1 %v1860_v59 }
 0x8d1   :  { %v1855_v2 = vpop.xlane.xlu0 %1854 }
 0x8d2   :  { %v1857_v3 = vmul.f32 0.03125, %v1855_v2  ;;  %v1852_v4 = vpop.xlane.xlu1 %1851 }
 0x8d3   :  { %v1856_v6 = vmul.f32 0.03125, %v1852_v4 }
 0x8d4   :  { %v1869_v12 = vmul.f32 %v1857_v3, %v1857_v3  ;;  %v1873_v10 = vsub.f32 %v1847_v55, %v1857_v3 }
 0x8d5   :  { %v1865_v11 = vpop.xlane.xlu0 %1864  ;;  %v1868_v15 = vmul.f32 %v1856_v6, %v1856_v6  ;;  %v1872_v22 = vsub.f32 %v1846_v56, %v1856_v6 }
 0x8d6   :  { %v1867_v13 = vmul.f32 0.03125, %v1865_v11  ;;  %v1862_v14 = vpop.xlane.xlu1 %1861 }
 0x8d7   :  { %v1866_v16 = vmul.f32 0.03125, %v1862_v14 }
 0x8d8   :  { %v1871_v17 = vsub.f32 %v1867_v13, %v1869_v12 }
 0x8d9   :  { %v1870_v18 = vsub.f32 %v1866_v16, %v1868_v15 }
 0x8da   :  { %v1875_v19 = vadd.f32 1e-05, %v1871_v17 }
 0x8db   :  { %v1874_v20 = vadd.f32 1e-05, %v1870_v18 }
 0x8dc   :  { %4371 = vrsqrt.f32 %v1875_v19 }
 0x8dd   :  { %4373 = vrsqrt.f32 %v1874_v20 }
 0x8e6   :  { %v4372_v21 = vpop.eup %4371 }
 0x8e7   :  { %v4374_v24 = vpop.eup %4373  ;;  %v1879_v25 = vmul.f32 %v4372_v21, %v1873_v10 }
 0x8e8   :  { %v1878_v26 = vmul.f32 %v4374_v24, %v1872_v22 }
 0x8e9   :  { %v1887_v28 = vmul.f32 %v3786_v23, %v1879_v25 }
 0x8ea   :  { %v1886_v29 = vmul.f32 %v3786_v23, %v1878_v26 }
 0x8eb   :  { %v4861_v32 = vadd.f32 %v3787_v27, %v1887_v28 }
 0x8ec   :  { %v4859_v30 = vadd.f32 %v3787_v27, %v1886_v29 }
 0x8ee   :  { %4112 = vmatprep.mubr.msk.f32.mxu1 %vm69_vm0, %v4859_v30 }
 0x8ef   :  { %4113 = vmatmul.mubr.msk.f32.vlgmr.msra.gmra.mrb[22].mxu1 %vm69_vm0, %v4861_v32 }
 0x8f0   :  { %4117 = vmatprep.mubr.msk.f32.mxu1 %vm4455_vm1, %v4454_v8 }
 0x9c2   :  { %v4869_v33 = vpop.f32.mrb[22].mxu1 }
 0x9c3   :  { %v4871_v34 = vpop.f32.mrb[23].mxu1  ;;  %v1983_v36 = vmul.f32 0.35355338, %v4869_v33 }
 0x9c4   :  { %2153 = vrot.lane.b32.xlu0 %v4871_v34, %s4458_s20  ;;  %1985 = vrot.lane.b32.xlu1 %v4871_v34, %s4456_s1  ;;  %v1982_v35 = vmul.f32 0.35355338, %v4871_v34 }
 0x9c8   :  { %2322 = vrot.lane.b32.xlu0 %v1982_v35, %s4460_s22  ;;  %2151 = vrot.lane.b32.xlu1 %v1982_v35, %s4457_s19 }
 0x9cc   :  { %2493 = vrot.lane.b32.xlu0 %v1982_v35, %s4462_s24  ;;  %2324 = vrot.lane.b32.xlu1 %v4871_v34, %s4459_s21 }
 0x9d0   :  { %2833 = vrot.lane.b32.xlu0 %v4869_v33, %s4458_s20  ;;  %2495 = vrot.lane.b32.xlu1 %v4871_v34, %s4461_s23  ;;  %s5174_s20 = smov 16  }
 0x9d4   :  { %3004 = vrot.lane.b32.xlu0 %v4869_v33, %s4459_s21  ;;  %2665 = vrot.lane.b32.xlu1 %v4869_v33, %s4456_s1  ;;  %s5172_s1 = smov 40   ;;  %s5175_s21 = smov 24  }
 0x9d8   :  { %3175 = vrot.lane.b32.xlu0 %v4869_v33, %s4461_s23  ;;  %2831 = vrot.lane.b32.xlu1 %v1983_v36, %s4457_s19  ;;  %s5173_s19 = smov 48  }
 0x9dc   :  { %2074 = vrot.lane.b32.xlu0 %v4871_v34, %s4463_s25  ;;  %3002 = vrot.lane.b32.xlu1 %v1983_v36, %s4460_s22 }
 0x9e0   :  { %3173 = vrot.lane.b32.xlu1 %v1983_v36, %s4462_s24 }
 0x9e4   :  { %2241 = vrot.lane.b32.xlu1 %v4871_v34, %s4464_s26 }
 0xa36   :  { %v2154_v37 = vpop.permute.xlu0 %2153  ;;  %v1986_v38 = vpop.permute.xlu1 %1985 }
 0xa37   :  { %4116 = vmatpush3.xpose.msk.msra.mxu1 %vm156_vm2, %v1986_v38  ;;  %4126 = vmatpush3.xpose.msk.msra.mxu0 %vm156_vm2, %v2154_v37 }
 0xa38   :  { %4135 = vmatprep.subr.mxu0 %v4454_v8  ;;  %4120 = vmatprep.subr.mxu1 %v4454_v8 }
 0xa3a   :  { %v2323_v39 = vpop.permute.xlu0 %2322  ;;  %v2152_v40 = vpop.permute.xlu1 %2151  ;;  %4118 = vmatmul.mubr.msk.f32.vlgmr.msra.gmra.mrb[24].mxu1 %vm156_vm2, %v1982_v35 }
 0xa3b   :  { %4128 = vmatmul.mubr.msk.f32.vlgmr.msra.gmra.mrb[18].mxu0 %vm156_vm2, %v2152_v40  ;;  %4122 = vmatprep.mubr.msk.f32.mxu1 %vm4455_vm1, %v4454_v8 }
 0xa3c   :  { %4137 = vmatprep.mubr.msk.f32.mxu0 %vm4455_vm1, %v4454_v8 }
 0xa3e   :  { %v2494_v41 = vpop.permute.xlu0 %2493  ;;  %v2325_v42 = vpop.permute.xlu1 %2324 }
 0xa3f   :  { %4136 = vmatpush3.xpose.msk.msra.mxu0 %vm156_vm2, %v2325_v42 }
 0xa40   :  { %4145 = vmatprep.subr.mxu0 %v4454_v8 }
 0xa42   :  { %v2834_v43 = vpop.permute.xlu0 %2833  ;;  %4138 = vmatmul.mubr.msk.f32.vlgmr.msra.gmra.mrb[20].mxu0 %vm156_vm2, %v2323_v39  ;;  %v2496_v44 = vpop.permute.xlu1 %2495 }
 0xa43   :  { %4146 = vmatpush3.xpose.msk.msra.mxu0 %vm156_vm2, %v2496_v44  ;;  %4147 = vmatprep.mubr.msk.f32.mxu0 %vm4455_vm1, %v4454_v8 }
 0xa44   :  { %4155 = vmatprep.subr.mxu0 %v4454_v8 }
 0xa46   :  { %v3005_v45 = vpop.permute.xlu0 %3004  ;;  %4148 = vmatmul.mubr.msk.f32.vlgmr.msra.gmra.mrb[22].mxu0 %vm156_vm2, %v2494_v41  ;;  %v2666_v46 = vpop.permute.xlu1 %2665 }
 0xa47   :  { %4156 = vmatpush3.xpose.msk.msra.mxu0 %vm156_vm2, %v2666_v46  ;;  %4157 = vmatprep.mubr.msk.f32.mxu0 %vm4455_vm1, %v4454_v8 }
 0xa48   :  { %4165 = vmatprep.subr.mxu0 %v4454_v8 }
 0xa4a   :  { %v3176_v47 = vpop.permute.xlu0 %3175  ;;  %4158 = vmatmul.mubr.msk.f32.vlgmr.msra.gmra.mrb[24].mxu0 %vm156_vm2, %v1983_v36  ;;  %v2832_v48 = vpop.permute.xlu1 %2831 }
 0xa4b   :  { %4166 = vmatpush3.xpose.msk.msra.mxu0 %vm156_vm2, %v2834_v43  ;;  %4167 = vmatprep.mubr.msk.f32.mxu0 %vm4455_vm1, %v4454_v8 }
 0xa4c   :  { %4175 = vmatprep.subr.mxu0 %v4454_v8 }
 0xa4e   :  { %v2075_v50 = vpop.permute.xlu0 %2074  ;;  %4168 = vmatmul.mubr.msk.f32.vlgmr.msra.gmra.mrb[26].mxu0 %vm156_vm2, %v2832_v48  ;;  %v3003_v51 = vpop.permute.xlu1 %3002 }
 0xa4f   :  { %4121 = vmatpush3.msra.mxu1 %v2075_v50  ;;  %4176 = vmatpush3.xpose.msk.msra.mxu0 %vm156_vm2, %v3005_v45 }
 0xa50   :  { %4177 = vmatprep.mubr.msk.f32.mxu0 %vm4455_vm1, %v4454_v8  ;;  %4185 = vmatprep.subr.mxu0 %v4454_v8 }
 0xa51   :  { %4130 = vmatprep.subr.mxu1 %v4454_v8 }
 0xa52   :  { %4178 = vmatmul.mubr.msk.f32.vlgmr.msra.gmra.mrb[28].mxu0 %vm156_vm2, %v3003_v51  ;;  %v3174_v52 = vpop.permute.xlu1 %3173 }
 0xa53   :  { %4186 = vmatpush3.xpose.msk.msra.mxu0 %vm156_vm2, %v3176_v47  ;;  %4187 = vmatprep.mubr.msk.f32.mxu0 %vm4455_vm1, %v4454_v8 }
 0xa56   :  { %4188 = vmatmul.mubr.msk.f32.vlgmr.msra.gmra.mrb[30].mxu0 %vm156_vm2, %v3174_v52  ;;  %v4967_v21 = vpop.permute.xlu1 %2241 }
 0xb0d   :  { %v2058_v53 = vpop.f32.mrb[24].mxu1 }
 0xb0e   :  { %v2062_v54 = vsel %vm4642_vm3, %v2058_v53, -1000000.0  ;;  %v4119_v55 = vpop.f32.mrb[25].mxu1  ;;  %v2225_v56 = vpop.f32.mrb[18].mxu0 }
 0xb0f   :  { %v2229_v57 = vsel %vm4642_vm3, %v2225_v56, -1000000.0  ;;  %v4129_v9 = vpop.f32.mrb[19].mxu0  ;;  %v2063_v7 = vsel %vm156_vm2, %v2062_v54, -inf }
 0xb10   :  { %2064 = vmax.xlane.f32.xlu0 %v2063_v7  ;;  %v2230_v5 = vsel %vm156_vm2, %v2229_v57, -inf }
 0xb11   :  { %2231 = vmax.xlane.f32.xlu1 %v2230_v5 }
 0xb15   :  { %v2396_v58 = vpop.f32.mrb[20].mxu0 }
 0xb16   :  { %v2400_v59 = vsel %vm4642_vm3, %v2396_v58, -1000000.0  ;;  %v4139_v60 = vpop.f32.mrb[21].mxu0 }
 0xb17   :  { %v2401_v61 = vsel %vm156_vm2, %v2400_v59, -inf }
 0xb18   :  { %2402 = vmax.xlane.f32.xlu0 %v2401_v61 }
 0xb19   :  { %v2567_v62 = vpop.f32.mrb[22].mxu0 }
 0xb1a   :  { %v2571_v63 = vsel %vm4642_vm3, %v2567_v62, -1000000.0  ;;  %v4149_v0 = vpop.f32.mrb[23].mxu0 }
 0xb1b   :  { %v2572_v1 = vsel %vm156_vm2, %v2571_v63, -inf }
 0xb1c   :  { %2573 = vmax.xlane.f32.xlu0 %v2572_v1 }
 0xb1d   :  { %v2738_v2 = vpop.f32.mrb[24].mxu0 }
 0xb1e   :  { %v2742_v3 = vsel %vm4658_vm4, %v2738_v2, -1000000.0  ;;  %v4159_v4 = vpop.f32.mrb[25].mxu0 }
 0xb1f   :  { %v2743_v6 = vsel %vm156_vm2, %v2742_v3, -inf }
 0xb20   :  { %2744 = vmax.xlane.f32.xlu1 %v2743_v6 }
 0xb21   :  { %v2905_v11 = vpop.f32.mrb[26].mxu0 }
 0xb22   :  { %v2909_v12 = vsel %vm4658_vm4, %v2905_v11, -1000000.0  ;;  %v4169_v13 = vpop.f32.mrb[27].mxu0 }
 0xb23   :  { %v2910_v31 = vsel %vm156_vm2, %v2909_v12, -inf }
 0xb24   :  { %2911 = vmax.xlane.f32.xlu0 %v2910_v31 }
 0xb25   :  { %v3076_v14 = vpop.f32.mrb[28].mxu0 }
 0xb26   :  { %v3080_v15 = vsel %vm4658_vm4, %v3076_v14, -1000000.0  ;;  %v4179_v16 = vpop.f32.mrb[29].mxu0 }
 0xb27   :  { %v3081_v17 = vsel %vm156_vm2, %v3080_v15, -inf }
 0xb28   :  { %3082 = vmax.xlane.f32.xlu1 %v3081_v17 }
 0xb29   :  { %v3247_v18 = vpop.f32.mrb[30].mxu0 }
 0xb2a   :  { %v3251_v19 = vsel %vm4658_vm4, %v3247_v18, -1000000.0  ;;  %v4189_v20 = vpop.f32.mrb[31].mxu0 }
 0xb2b   :  { %v3252_v10 = vsel %vm156_vm2, %v3251_v19, -inf }
 0xb2c   :  { %3253 = vmax.xlane.f32.xlu0 %v3252_v10 }
 0xb39   :  { %2583 = vrot.lane.b32.xlu1 %v4871_v34, %s5172_s1 }
 0xb42   :  { %2412 = vrot.lane.b32.xlu0 %v4871_v34, %s5173_s19 }
 0xb9d   :  { %v2065_v22 = vpop.xlane.xlu0 %2064 }
 0xb9e   :  { %v2066_v23 = vsub.f32 %v2062_v54, %v2065_v22  ;;  %v2232_v24 = vpop.xlane.xlu1 %2231 }
 0xb9f   :  { %v2233_v25 = vsub.f32 %v2229_v57, %v2232_v24 }
 0xba0   :  { %v2067_v26 = vmul.f32 1.442695, %v2066_v23 }
 0xba1   :  { %v2234_v27 = vmul.f32 1.442695, %v2233_v25 }
 0xba2   :  { %4375 = vpow2.f32 %v2067_v26 }
 0xba3   :  { %4377 = vpow2.f32 %v2234_v27 }
 0xba5   :  { %v2403_v49 = vpop.xlane.xlu0 %2402 }
 0xba6   :  { %v2404_v28 = vsub.f32 %v2400_v59, %v2403_v49 }
 0xba8   :  { %v2405_v29 = vmul.f32 1.442695, %v2404_v28 }
 0xba9   :  { %v2574_v35 = vpop.xlane.xlu0 %2573 }
 0xbaa   :  { %4379 = vpow2.f32 %v2405_v29  ;;  %v2575_v36 = vsub.f32 %v2571_v63, %v2574_v35 }
 0xbac   :  { %v4376_v37 = vpop.eup %4375  ;;  %v2576_v38 = vmul.f32 1.442695, %v2575_v36 }
 0xbad   :  { %v4378_v39 = vpop.eup %4377  ;;  %v2069_v34 = vsel %vm156_vm2, %v4376_v37, 0.0  ;;  %v2745_v45 = vpop.xlane.xlu1 %2744 }
 0xbae   :  { %4381 = vpow2.f32 %v2576_v38  ;;  %2070 = vadd.xlane.f32.xlu1 %v2069_v34  ;;  %v2236_v40 = vsel %vm156_vm2, %v4378_v39, 0.0  ;;  %v2746_v46 = vsub.f32 %v2742_v3, %v2745_v45 }
 0xbaf   :  { %2237 = vadd.xlane.f32.xlu0 %v2236_v40 }
 0xbb0   :  { %v2747_v51 = vmul.f32 1.442695, %v2746_v46  ;;  %v3820_v46 = vld [vmem:[%s5150_s3 + $0x30] sm:$0xff] }
 0xbb1   :  { %v2912_v47 = vpop.xlane.xlu0 %2911 }
 0xbb2   :  { %v2913_v50 = vsub.f32 %v2909_v12, %v2912_v47  ;;  %4383 = vpow2.f32 %v2747_v51  ;;  %v3821_v47 = vld [vmem:[%s5150_s3 + $0x38] sm:$0xff] }
 0xbb4   :  { %v4380_v41 = vpop.eup %4379  ;;  %v2914_v54 = vmul.f32 1.442695, %v2913_v50 }
 0xbb5   :  { %v2407_v42 = vsel %vm156_vm2, %v4380_v41, 0.0  ;;  %v3083_v48 = vpop.xlane.xlu1 %3082 }
 0xbb6   :  { %2408 = vadd.xlane.f32.xlu1 %v2407_v42  ;;  %v3084_v52 = vsub.f32 %v3080_v15, %v3083_v48  ;;  %4385 = vpow2.f32 %v2914_v54  ;;  %v3819_v42 = vld [vmem:[%s5150_s3 + $0x28] sm:$0xff]  ;;  %v4288_v48 = vpack.c.bf16 %v3821_v47, %v3820_v46 }
 0xbb8   :  { %v4972_v43 = vpop.eup %4381  ;;  %v3085_v55 = vmul.f32 1.442695, %v3084_v52 }
 0xbb9   :  { %v2578_v44 = vsel %vm156_vm2, %v4972_v43, 0.0  ;;  %v3254_v53 = vpop.xlane.xlu0 %3253  ;;  %v2584_v63 = vpop.permute.xlu1 %2583 }
 0xbba   :  { %2579 = vadd.xlane.f32.xlu0 %v2578_v44  ;;  %v3255_v56 = vsub.f32 %v3251_v19, %v3254_v53  ;;  %4387 = vpow2.f32 %v3085_v55 }
 0xbbc   :  { %v3256_v57 = vmul.f32 1.442695, %v3255_v56  ;;  %v4384_v9 = vpop.eup %4383 }
 0xbbd   :  { %v2749_v5 = vsel %vm156_vm2, %v4384_v9, 0.0  ;;  %v2413_v0 = vpop.permute.xlu0 %2412 }
 0xbbe   :  { %4389 = vpow2.f32 %v3256_v57 }
 0xbc0   :  { %v4980_v7 = vpop.eup %4385 }
 0xbc1   :  { %v2916_v60 = vsel %vm156_vm2, %v4980_v7, 0.0 }
 0xbc4   :  { %v4983_v58 = vpop.eup %4387 }
 0xbc5   :  { %v3087_v59 = vsel %vm156_vm2, %v4983_v58, 0.0 }
 0xbc7   :  { %2921 = vrot.lane.b32.xlu1 %v4869_v33, %s4464_s26 }
 0xbc8   :  { %v4989_v61 = vpop.eup %4389 }
 0xbc9   :  { %v3258_v62 = vsel %vm156_vm2, %v4989_v61, 0.0 }
 0xbd0   :  { %2754 = vrot.lane.b32.xlu0 %v4869_v33, %s4463_s25 }
 0xbeb   :  { %2750 = vadd.xlane.f32.xlu1 %v2749_v5 }
 0xbef   :  { %3088 = vadd.xlane.f32.xlu1 %v3087_v59  ;;  %2917 = vadd.xlane.f32.xlu0 %v2916_v60 }
 0xbf3   :  { %3259 = vadd.xlane.f32.xlu1 %v3258_v62 }
 0xc04   :  { %3263 = vrot.lane.b32.xlu1 %v4869_v33, %s5172_s1  ;;  %s4470_s1 = smov [#allocation6]  }
 0xc05   :  { %3092 = vrot.lane.b32.xlu0 %v4869_v33, %s5173_s19  ;;  %s3737_s19 = sshll.u32 %s4470_s1, 4  ;;  %s3738_s19 = int_to_ptr.vmem [resolvable:$true] %s3737_s19 }
 0xc06   :  { %p4432_p6 = scmp.lt.s32.totalorder %s3738_s19, %s3738_s19 }
 0xc3b   :  { %v2071_v1 = vpop.xlane.xlu1 %2070 }
 0xc3c   :  { %4391 = vrcp.f32 %v2071_v1  ;;  %v2238_v2 = vpop.xlane.xlu0 %2237 }
 0xc3d   :  { %4393 = vrcp.f32 %v2238_v2 }
 0xc43   :  { %v2409_v3 = vpop.xlane.xlu1 %2408 }
 0xc44   :  { %4395 = vrcp.f32 %v2409_v3 }
 0xc46   :  { %v4392_v4 = vpop.eup %4391 }
 0xc47   :  { %v2073_v6 = vmul.f32 %v4392_v4, %v4376_v37  ;;  %v2580_v11 = vpop.xlane.xlu0 %2579  ;;  %v4394_v12 = vpop.eup %4393 }
 0xc48   :  { %4397 = vrcp.f32 %v2580_v11  ;;  %v2240_v33 = vmul.f32 %v4394_v12, %v4378_v39  ;;  %v2922_v17 = vpop.permute.xlu1 %2921  ;;  %v3829_v11 = vld [vmem:[%s5153_s6 + $0x28] sm:$0xff]  ;;  %v3830_v12 = vld [vmem:[%s5153_s6 + $0x30] sm:$0xff] }
 0xc49   :  { %4123 = vmatmul.mubr.msk.f32.vlgmr.msra.gmra.mrb[26].mxu1 %vm156_vm2, %v2073_v6 }
 0xc4a   :  { %4131 = vmatpush3.msra.mxu1 %v4967_v21  ;;  %4132 = vmatprep.mubr.msk.f32.mxu1 %vm4455_vm1, %v4454_v8 }
 0xc4b   :  { %4140 = vmatprep.subr.mxu1 %v4454_v8  ;;  %v2755_v16 = vpop.permute.xlu0 %2754 }
 0xc4d   :  { %4133 = vmatmul.mubr.msk.f32.vlgmr.msra.gmra.mrb[28].mxu1 %vm156_vm2, %v2240_v33 }
 0xc4e   :  { %v4396_v13 = vpop.eup %4395  ;;  %4141 = vmatpush3.msra.mxu1 %v2413_v0  ;;  %4142 = vmatprep.mubr.msk.f32.mxu1 %vm4455_vm1, %v4454_v8 }
 0xc4f   :  { %v2411_v31 = vmul.f32 %v4396_v13, %v4380_v41  ;;  %4150 = vmatprep.subr.mxu1 %v4454_v8  ;;  %v3818_v41 = vld [vmem:[%s5150_s3 + $0x20] sm:$0xff]  ;;  %v3831_v13 = vld [vmem:[%s5153_s6 + $0x38] sm:$0xff] }
 0xc50   :  { %v4284_v44 = vpack.c.bf16 %v3819_v42, %v3818_v41  ;;  %v3827_v42 = vld [vmem:[%s5152_s5 + $0x1] ss:$0 sm:$0xff] }
 0xc51   :  { %4143 = vmatmul.mubr.msk.f32.vlgmr.msra.gmra.mrb[30].mxu1 %vm156_vm2, %v2411_v31  ;;  %v4296_v31 = vpack.c.bf16 %v3831_v13, %v3830_v12 }
 0xc52   :  { %v4398_v14 = vpop.eup %4397  ;;  %4151 = vmatpush3.msra.mxu1 %v2584_v63  ;;  %4152 = vmatprep.mubr.msk.f32.mxu1 %vm4455_vm1, %v4454_v8 }
 0xc53   :  { %v2582_v15 = vmul.f32 %v4398_v14, %v4972_v43  ;;  %4160 = vmatprep.subr.mxu1 %v4454_v8  ;;  %4285 = vmatprep.subr.bf16.mxu0 %v4284_v44  ;;  %v3836_v14 = vld [vmem:[%s5155_s8 + $0x40] sm:$0xff] }
 0xc54   :  { %4287 = vmatpush3.bf16.msra.mxu0 %v4284_v44 }
 0xc55   :  { %4153 = vmatmul.mubr.msk.f32.vlgmr.msra.gmra.mrb[32].mxu1 %vm156_vm2, %v2582_v15  ;;  %4289 = vmatprep.subr.bf16.mxu0 %v4288_v48  ;;  %v3837_v15 = vld [vmem:[%s5155_s8 + $0x48] sm:$0xff] }
 0xc56   :  { %4161 = vmatpush3.msra.mxu1 %v2755_v16  ;;  %4162 = vmatprep.mubr.msk.f32.mxu1 %vm4455_vm1, %v4454_v8  ;;  %v3838_v16 = vld [vmem:[%s5155_s8 + $0x50] sm:$0xff] }
 0xc57   :  { %4170 = vmatprep.subr.mxu1 %v4454_v8 }
 0xc58   :  { %4291 = vmatpush3.bf16.msra.mxu0 %v4288_v48 }
 0xc78   :  { %v2751_v18 = vpop.xlane.xlu1 %2750 }
 0xc79   :  { %4399 = vrcp.f32 %v2751_v18  ;;  %v3839_v18 = vld [vmem:[%s5155_s8 + $0x58] sm:$0xff] }
 0xc7c   :  { %v3089_v19 = vpop.xlane.xlu1 %3088  ;;  %v2918_v20 = vpop.xlane.xlu0 %2917 }
 0xc7d   :  { %4401 = vrcp.f32 %v2918_v20  ;;  %v3840_v20 = vld [vmem:[%s5155_s8 + $0x60] sm:$0xff] }
 0xc7e   :  { %4403 = vrcp.f32 %v3089_v19  ;;  %v4304_v19 = vpack.c.bf16 %v3839_v18, %v3838_v16 }
 0xc80   :  { %v3260_v10 = vpop.xlane.xlu1 %3259  ;;  %v3093_v26 = vpop.permute.xlu0 %3092 }
 0xc81   :  { %4405 = vrcp.f32 %v3260_v10  ;;  %v3841_v10 = vld [vmem:[%s5155_s8 + $0x68] sm:$0xff] }
 0xc83   :  { %v4400_v21 = vpop.eup %4399 }
 0xc84   :  { %v2753_v22 = vmul.f32 %v4400_v21, %v4384_v9  ;;  %v3264_v28 = vpop.permute.xlu1 %3263  ;;  %v4308_v21 = vpack.c.bf16 %v3841_v10, %v3840_v20 }
 0xc86   :  { %4163 = vmatmul.mubr.msk.f32.vlgmr.msra.gmra.mrb[34].mxu1 %vm156_vm2, %v2753_v22 }
 0xc87   :  { %4171 = vmatpush3.msra.mxu1 %v2922_v17  ;;  %4172 = vmatprep.mubr.msk.f32.mxu1 %vm4455_vm1, %v4454_v8  ;;  %v4402_v23 = vpop.eup %4401  ;;  %v4300_v17 = vpack.c.bf16 %v3837_v15, %v3836_v14 }
 0xc88   :  { %4180 = vmatprep.subr.mxu1 %v4454_v8  ;;  %v2920_v24 = vmul.f32 %v4402_v23, %v4980_v7  ;;  %v4404_v25 = vpop.eup %4403 }
 0xc89   :  { %v3091_v27 = vmul.f32 %v4404_v25, %v4983_v58  ;;  %4301 = vmatprep.subr.bf16.mxu0 %v4300_v17 }
 0xc8a   :  { %4173 = vmatmul.mubr.msk.f32.vlgmr.msra.gmra.mrb[36].mxu1 %vm156_vm2, %v2920_v24 }
 0xc8b   :  { %4181 = vmatpush3.msra.mxu1 %v3093_v26  ;;  %4182 = vmatprep.mubr.msk.f32.mxu1 %vm4455_vm1, %v4454_v8  ;;  %v4406_v49 = vpop.eup %4405 }
 0xc8c   :  { %4190 = vmatprep.subr.mxu1 %v4454_v8  ;;  %v3262_v29 = vmul.f32 %v4406_v49, %v4989_v61 }
 0xc8e   :  { %4183 = vmatmul.mubr.msk.f32.vlgmr.msra.gmra.mrb[38].mxu1 %vm156_vm2, %v3091_v27 }
 0xc8f   :  { %4191 = vmatpush3.msra.mxu1 %v3264_v28  ;;  %4192 = vmatprep.mubr.msk.f32.mxu1 %vm4455_vm1, %v4454_v8 }
 0xc92   :  { %4193 = vmatmul.mubr.msk.f32.vlgmr.msra.gmra.mrb[40].mxu1 %vm156_vm2, %v3262_v29 }
 0xd1c   :  { %v2146_v35 = vpop.f32.mrb[26].mxu1 }
 0xd1d   :  { %2150 = vst.msk [vmem:[#allocation2] sm:$0xff] %vm156_vm2, %v2146_v35  ;;  %v4124_v36 = vpop.f32.mrb[27].mxu1 }
 0xd20   :  { %v2313_v37 = vpop.f32.mrb[28].mxu1 }
 0xd21   :  { %2318 = vrot.lane.b32.xlu0 %v2313_v37, %s4467_s30  ;;  %v4134_v38 = vpop.f32.mrb[29].mxu1 }
 0xd24   :  { %v2484_v39 = vpop.f32.mrb[30].mxu1 }
 0xd25   :  { %2489 = vrot.lane.b32.xlu1 %v2484_v39, %s5174_s20  ;;  %v4144_v34 = vpop.f32.mrb[31].mxu1 }
 0xd28   :  { %v2655_v40 = vpop.f32.mrb[32].mxu1 }
 0xd29   :  { %2660 = vrot.lane.b32.xlu1 %v2655_v40, %s5175_s21  ;;  %v4154_v8 = vpop.f32.mrb[33].mxu1 }
 0xd2a   :  { %v3826_v8 = vld [vmem:[%s5151_s4 + $0x1] ss:$0 sm:$0xff] }
 0xd59   :  { %v2826_v43 = vpop.f32.mrb[34].mxu1 }
 0xd5a   :  { %2830 = vst.msk [vmem:[#allocation2 + $0x8] sm:$0xff] %vm156_vm2, %v2826_v43  ;;  %v4164_v45 = vpop.f32.mrb[35].mxu1 }
 0xd5d   :  { %v2993_v50 = vpop.f32.mrb[36].mxu1 }
 0xd5e   :  { %2998 = vrot.lane.b32.xlu0 %v2993_v50, %s4467_s30  ;;  %v4174_v51 = vpop.f32.mrb[37].mxu1 }
 0xd5f   :  { %v3842_v51 = vld [vmem:[%s5155_s8 + $0x70] sm:$0xff] }
 0xd61   :  { %v3164_v52 = vpop.f32.mrb[38].mxu1 }
 0xd62   :  { %3169 = vrot.lane.b32.xlu0 %v3164_v52, %s5174_s20  ;;  %v4184_v53 = vpop.f32.mrb[39].mxu1  ;;  %v3843_v52 = vld [vmem:[%s5155_s8 + $0x78] sm:$0xff]  ;;  %s4427_s20 = scalar_lea.vmem %s3738_s19, 256 }
 0xd63   :  { %v4312_v53 = vpack.c.bf16 %v3843_v52, %v3842_v51  ;;  %p4428_p5 = scmp.ne.s32.totalorder %s3738_s19, %s4427_s20  ;;  %p4433_p7 = scmp.lt.s32.totalorder %s4427_s20, %s4427_s20 }
 0xd65   :  { %v3335_v54 = vpop.f32.mrb[40].mxu1  ;;  %p4434_p8 = por %p4433_p7, %p4432_p6 }
 0xd66   :  { %3340 = vrot.lane.b32.xlu1 %v3335_v54, %s5175_s21  ;;  %v4194_v55 = vpop.f32.mrb[41].mxu1  ;;  %v3833_v54 = vld [vmem:[%s5154_s7 + $0x1] ss:$0 sm:$0xff] }
 0xd67   :  { %p4435_p9 = pnand %p4434_p8, %p4428_p5 }
 0xd93   :  { %v2319_v56 = vpop.permute.xlu0 %2318 }
 0xd94   :  { %2321 = vst.msk [vmem:[#allocation2] sm:$0xff] %vm491_vm5, %v2319_v56 }
 0xd97   :  { %v2490_v57 = vpop.permute.xlu1 %2489 }
 0xd98   :  { %2492 = vst.msk [vmem:[#allocation2] sm:$0xff] %vm663_vm6, %v2490_v57 }
 0xd9b   :  { %v2661_v9 = vpop.permute.xlu1 %2660 }
 0xd9c   :  { %2663 = vst.msk [vmem:[#allocation2] sm:$0xff] %vm835_vm7, %v2661_v9 }
 0xda3   :  { %v3344_v7 = vld [vmem:[#allocation2] sm:$0xff] }
 0xda4   :  { %4203 = vmatprep.mubr.msk.f32.mxu0 %vm69_vm0, %v3344_v7 }
 0xdd0   :  { %v2999_v5 = vpop.permute.xlu0 %2998 }
 0xdd1   :  { %3001 = vst.msk [vmem:[#allocation2 + $0x8] sm:$0xff] %vm491_vm5, %v2999_v5 }
 0xdd4   :  { %v3170_v58 = vpop.permute.xlu0 %3169 }
 0xdd5   :  { %3172 = vst.msk [vmem:[#allocation2 + $0x8] sm:$0xff] %vm663_vm6, %v3170_v58  ;;  %v3845_v58 = vld [vmem:[%s5156_s9 + $0x1] ss:$0 sm:$0xff] }
 0xdd8   :  { %v3341_v59 = vpop.permute.xlu1 %3340 }
 0xdd9   :  { %3343 = vst.msk [vmem:[#allocation2 + $0x8] sm:$0xff] %vm835_vm7, %v3341_v59 }
 0xde0   :  { %v3345_v60 = vld [vmem:[#allocation2 + $0x8] sm:$0xff] }
 0xde1   :  { %4204 = vmatmul.mubr.msk.f32.vlgmr.msra.gmra.mrb[32].mxu0 %vm69_vm0, %v3345_v60 }
 0xde2   :  { %4303 = vmatpush3.bf16.msra.mxu0 %v4300_v17 }
 0xde3   :  { %4305 = vmatprep.subr.bf16.mxu0 %v4304_v19 }
 0xde6   :  { %4307 = vmatpush3.bf16.msra.mxu0 %v4304_v19 }
 0xde7   :  { %4309 = vmatprep.subr.bf16.mxu0 %v4308_v21 }
 0xdea   :  { %4311 = vmatpush3.bf16.msra.mxu0 %v4308_v21 }
 0xdeb   :  { %4313 = vmatprep.subr.bf16.mxu0 %v4312_v53 }
 0xdee   :  { %4315 = vmatpush3.bf16.msra.mxu0 %v4312_v53 }
 0xeb4   :  { %v4205_v61 = vpop.f32.mrb[32].mxu0 }
 0xeb5   :  { %v5059_v62 = vadd.f32 %v4205_v61, %v4861_v32  ;;  %v3423_v63 = vpop.f32.mrb[33].mxu0 }
 0xeb6   :  { %v3432_v0 = vadd.f32 %v3423_v63, %v4859_v30  ;;  %v3828_v30 = vld [vmem:[%s5153_s6 + $0x20] sm:$0xff] }
 0xeb7   :  { %v3441_v1 = vsel %vm69_vm0, %v5059_v62, 0.0  ;;  %v3447_v6 = vmul.f32 %v5059_v62, %v5059_v62  ;;  %v4292_v33 = vpack.c.bf16 %v3829_v11, %v3828_v30 }
 0xeb8   :  { %3442 = vadd.xlane.f32.xlu1 %v3441_v1  ;;  %v3438_v2 = vsel %vm69_vm0, %v3432_v0, 0.0  ;;  %v3446_v3 = vmul.f32 %v3432_v0, %v3432_v0 }
 0xeb9   :  { %3439 = vadd.xlane.f32.xlu0 %v3438_v2  ;;  %v3451_v32 = vsel %vm69_vm0, %v3447_v6, 0.0  ;;  %4293 = vmatprep.subr.bf16.mxu1 %v4292_v33 }
 0xeba   :  { %v3448_v4 = vsel %vm69_vm0, %v3446_v3, 0.0  ;;  %4295 = vmatpush3.bf16.msra.mxu1 %v4292_v33 }
 0xebb   :  { %4297 = vmatprep.subr.bf16.mxu1 %v4296_v31 }
 0xebd   :  { %3449 = vadd.xlane.f32.xlu0 %v3448_v4 }
 0xebe   :  { %4299 = vmatpush3.bf16.msra.mxu1 %v4296_v31 }
 0xec1   :  { %3452 = vadd.xlane.f32.xlu0 %v3451_v32 }
 0xf45   :  { %v3443_v24 = vpop.xlane.xlu1 %3442 }
 0xf46   :  { %v3440_v22 = vpop.xlane.xlu0 %3439  ;;  %v3445_v26 = vmul.f32 0.03125, %v3443_v24  ;;  %v3850_v24 = vld [vmem:[%s5157_s10 + $0x1] ss:$0 sm:$0xff] }
 0xf47   :  { %v3444_v23 = vmul.f32 0.03125, %v3440_v22 }
 0xf48   :  { %v3457_v35 = vmul.f32 %v3445_v26, %v3445_v26  ;;  %v3461_v43 = vsub.f32 %v5059_v62, %v3445_v26 }
 0xf49   :  { %v3456_v27 = vmul.f32 %v3444_v23, %v3444_v23  ;;  %v3460_v34 = vsub.f32 %v3432_v0, %v3444_v23 }
 0xf4a   :  { %v3450_v25 = vpop.xlane.xlu0 %3449 }
 0xf4b   :  { %v3454_v49 = vmul.f32 0.03125, %v3450_v25 }
 0xf4d   :  { %v3458_v28 = vsub.f32 %v3454_v49, %v3456_v27  ;;  %v3851_v27 = vld [vmem:[%s5158_s11 + $0x1] ss:$0 sm:$0xff] }
 0xf4e   :  { %v3453_v29 = vpop.xlane.xlu0 %3452 }
 0xf4f   :  { %v3462_v36 = vadd.f32 1e-05, %v3458_v28  ;;  %v3455_v37 = vmul.f32 0.03125, %v3453_v29 }
 0xf51   :  { %4407 = vrsqrt.f32 %v3462_v36  ;;  %v3459_v38 = vsub.f32 %v3455_v37, %v3457_v35 }
 0xf53   :  { %v3463_v39 = vadd.f32 1e-05, %v3459_v38 }
 0xf55   :  { %4409 = vrsqrt.f32 %v3463_v39 }
 0xf5b   :  { %v4408_v40 = vpop.eup %4407 }
 0xf5c   :  { %v3466_v41 = vmul.f32 %v4408_v40, %v3460_v34 }
 0xf5e   :  { %v3474_v44 = vmul.f32 %v3826_v8, %v3466_v41 }
 0xf5f   :  { %v4410_v45 = vpop.eup %4409 }
 0xf60   :  { %v3467_v46 = vmul.f32 %v4410_v45, %v3461_v43  ;;  %v3482_v47 = vadd.f32 %v3827_v42, %v3474_v44 }
 0xf62   :  { %v3475_v48 = vmul.f32 %v3826_v8, %v3467_v46  ;;  %4214 = vmatprep.mubr.msk.f32.mxu1 %vm69_vm0, %v3482_v47 }
 0xf64   :  { %v3483_v50 = vadd.f32 %v3827_v42, %v3475_v48 }
 0xf66   :  { %4215 = vmatmul.mubr.msk.f32.vlgmr.msra.gmra.mrb[42].mxu1 %vm69_vm0, %v3483_v50 }
0x1039   :  { %v4216_v55 = vpop.f32.mrb[42].mxu1 }
0x103a   :  { %v3575_v56 = vadd.f32 %v4216_v55, %v3833_v54  ;;  %v3569_v57 = vpop.f32.mrb[43].mxu1 }
0x103b   :  { %v3570_v9 = vadd.f32 %v3833_v54, %v3569_v57 }
0x103c   :  { %v3579_v5 = vmax.f32 %v3575_v56, 0.0 }
0x103d   :  { %v3578_v7 = vmax.f32 %v3570_v9, 0.0 }
0x103f   :  { %4233 = vmatprep.mubr.msk.f32.mxu0 %vm1764_vm8, %v3578_v7 }
0x1040   :  { %4234 = vmatmul.mubr.msk.f32.vlgmr.msra.gmra.mrb[34].mxu0 %vm1764_vm8, %v3579_v5 }
0x1113   :  { %v4235_v59 = vpop.f32.mrb[34].mxu0 }
0x1114   :  { %v3675_v60 = vadd.f32 %v4235_v59, %v3845_v58  ;;  %v3669_v61 = vpop.f32.mrb[35].mxu0 }
0x1115   :  { %v3670_v62 = vadd.f32 %v3845_v58, %v3669_v61 }
0x1116   :  { %v3679_v63 = vadd.f32 %v3675_v60, %v3483_v50 }
0x1117   :  { %v3678_v0 = vadd.f32 %v3670_v62, %v3482_v47 }
0x1118   :  { %v3687_v1 = vsel %vm69_vm0, %v3679_v63, 0.0  ;;  %v3693_v2 = vmul.f32 %v3679_v63, %v3679_v63 }
0x1119   :  { %3688 = vadd.xlane.f32.xlu0 %v3687_v1  ;;  %v3684_v3 = vsel %vm69_vm0, %v3678_v0, 0.0  ;;  %v3692_v4 = vmul.f32 %v3678_v0, %v3678_v0 }
0x111a   :  { %3685 = vadd.xlane.f32.xlu1 %v3684_v3  ;;  %v3697_v6 = vsel %vm69_vm0, %v3693_v2, 0.0 }
0x111b   :  { %v3694_v32 = vsel %vm69_vm0, %v3692_v4, 0.0 }
0x111d   :  { %3698 = vadd.xlane.f32.xlu0 %v3697_v6 }
0x111e   :  { %3695 = vadd.xlane.f32.xlu1 %v3694_v32 }
0x11a6   :  { %v3689_v30 = vpop.xlane.xlu0 %3688 }
0x11a7   :  { %v3691_v11 = vmul.f32 0.03125, %v3689_v30  ;;  %v3686_v12 = vpop.xlane.xlu1 %3685 }
0x11a8   :  { %v3690_v33 = vmul.f32 0.03125, %v3686_v12 }
0x11a9   :  { %v3703_v31 = vmul.f32 %v3691_v11, %v3691_v11  ;;  %v3707_v21 = vsub.f32 %v3679_v63, %v3691_v11 }
0x11aa   :  { %v3699_v13 = vpop.xlane.xlu0 %3698  ;;  %v3702_v16 = vmul.f32 %v3690_v33, %v3690_v33  ;;  %v3706_v23 = vsub.f32 %v3678_v0, %v3690_v33 }
0x11ab   :  { %v3701_v14 = vmul.f32 0.03125, %v3699_v13  ;;  %v3696_v15 = vpop.xlane.xlu1 %3695 }
0x11ac   :  { %v3700_v17 = vmul.f32 0.03125, %v3696_v15 }
0x11ad   :  { %v3705_v18 = vsub.f32 %v3701_v14, %v3703_v31 }
0x11ae   :  { %v3704_v19 = vsub.f32 %v3700_v17, %v3702_v16 }
0x11af   :  { %v3709_v20 = vadd.f32 1e-05, %v3705_v18 }
0x11b0   :  { %v3708_v10 = vadd.f32 1e-05, %v3704_v19 }
0x11b1   :  { %4411 = vrsqrt.f32 %v3709_v20 }
0x11b2   :  { %4413 = vrsqrt.f32 %v3708_v10 }
0x11bb   :  { %v4412_v22 = vpop.eup %4411 }
0x11bc   :  { %v4414_v25 = vpop.eup %4413  ;;  %v3713_v26 = vmul.f32 %v4412_v22, %v3707_v21 }
0x11bd   :  { %v3712_v49 = vmul.f32 %v4414_v25, %v3706_v23 }
0x11be   :  { %v3721_v28 = vmul.f32 %v3850_v24, %v3713_v26 }
0x11bf   :  { %v3720_v29 = vmul.f32 %v3850_v24, %v3712_v49 }
0x11c0   :  { %v3729_v35 = vadd.f32 %v3851_v27, %v3721_v28 }
0x11c1   :  { %v3728_v36 = vadd.f32 %v3851_v27, %v3720_v29 }
0x11c2   :  { %3731 = vst.msk [vmem:[#allocation6 + $0x8] sm:$0xff] %vm69_vm0, %v3729_v35 }
0x11c3   :  { %3730 = vst.msk [vmem:[#allocation6] sm:$0xff] %vm69_vm0, %v3728_v36 }
0x11c4   :  { %4438 = shalt.err (!%p4435_p9)
}
0x11c5   :  { %s4439_s21 = scalar_lea.hbm %s5159_s12, 256 }
0x11c6   :  { %p4440_p10 = scmp.ne.s32.totalorder %s5159_s12, %s4439_s21  ;;  %p4443_p11 = scmp.lt.u32.totalorder %s4439_s21, %s5159_s12 }
0x11c8   :  { %p4445_p12 = pnand %p4443_p11, %p4440_p10 }
0x11ca   :  { %4448 = shalt.err (!%p4445_p12)
}
0x11cb   :  { %s4471_s25 = smov 128  }
0x11cc   :  { %3743 = dma.vmem_to_hbm [thread:$0]  %s3738_s19, 256, %s5159_s12, [#allocation4], %s4471_s25, %s4471_s25, %s4467_s30  }
0x11cd   :  { %4451 = dma.done.wait [#allocation4], 256  }
0x11ce   :  { %4452 = vsyncadd [#allocation4], 4294967040 }
0x11cf   :  { %3747 = vsyncpa [#allocation4], 1 }
0x11d0   :  { %3748 = vsyncpa [#allocation5], 1 }

</bundles_post_ra>
